<compile_context>
chip_gen: v5e
topology: v5e:2x2
jax: 0.10.0
libtpu: 0.0.40
codegen_flags: <defaults>
</compile_context>

<pallas_src>
import jax
import jax.numpy as jnp
import numpy as np
from jax.experimental import pallas as pl
from jax.experimental.pallas import tpu as pltpu

BN_EPS = 1e-5
# Halo sizes around the conv domain (>= max dilation = 3; top/bottom need 4 so the
# flat-slice im2col taps stay in bounds).
PT, PB, PL, PR = 4, 4, 4, 4


# ----------------------------------------------------------------------------
# Host-side constant matrices (column upsample / column mask / 2x2 avg pool)
# ----------------------------------------------------------------------------
def _make_col_mask(H, W, Wp):
    """(1, H*Wp) f32: 1 on valid columns [PL, PL+W) of each padded-width row."""
    m = np.zeros((1, H * Wp), np.float32)
    for r in range(H):
        m[0, r * Wp + PL:r * Wp + PL + W] = 1.0
    return jnp.asarray(m)


def _make_upsample_mat(w_in, Wp):
    """(w_in, Wp) f32: bilinear 2x column upsample (align_corners=False) fused with
    the left/right halo padding (halo columns are exact zeros)."""
    W = 2 * w_in
    B = np.zeros((w_in, Wp), np.float32)
    for k in range(W):
        j = k // 2
        if k % 2 == 0:
            B[max(j - 1, 0), PL + k] += 0.25
            B[j, PL + k] += 0.75
        else:
            B[j, PL + k] += 0.75
            B[min(j + 1, w_in - 1), PL + k] += 0.25
    return jnp.asarray(B)


def _make_pool_mat(W, Wp):
    """(2*Wp, W//2) f32: 2x2 average pool over a pair of consecutive padded rows."""
    Wo = W // 2
    P = np.zeros((2 * Wp, Wo), np.float32)
    for j in range(Wo):
        for dr in (0, 1):
            for dc in (0, 1):
                P[dr * Wp + PL + 2 * j + dc, j] = 0.25
    return jnp.asarray(P)


# ----------------------------------------------------------------------------
# Fused DilatedResidualBlock kernel (one batch element per grid step)
# ----------------------------------------------------------------------------
def _make_drb_kernel(h_in, w_in, H, W, cp, cs, cout, cf, *, upsample, pool, with_skip):
    """Ref order:
      x, [skip], mask, [upsample_mat], [pool_mat],
      w1, s1, b1, (wd, sd, bd) x3, w2a, w2b, w2c, s2, b2, [wf, bf],
      o_ref, spad_scratch, xpad_scratch
    """
    Wp = W + PL + PR
    Np = H * Wp
    cin = cp + cs
    Ho = H // 2 if pool else H
    Wo = W // 2 if pool else W
    f32, bf16 = jnp.float32, jnp.bfloat16

    def kernel(*refs):
        it = iter(refs)
        x_ref = next(it)
        skip_ref = next(it) if with_skip else None
        mask_ref = next(it)
        bup_ref = next(it) if upsample else None
        pool_ref = next(it) if pool else None
        w1_ref = next(it)
        s1_ref, b1_ref = next(it), next(it)
        dil_params = [(next(it), next(it), next(it)) for _ in range(3)]
        w2a_ref, w2b_ref, w2c_ref = next(it), next(it), next(it)
        s2_ref, b2_ref = next(it), next(it)
        if cf is not None:
            wf_ref, bfin_ref = next(it), next(it)
        o_ref = next(it)
        spad_ref = next(it)
        xpad_ref = next(it)

        mask = mask_ref[...]                                       # (1, Np) f32

        # ---- stage the stem input (optionally 2x-bilinear-upsampled) + skip into the
        # ---- column-padded flat scratch: rows [main | skip] along the channel axis
        spad_ref[...] = jnp.zeros((cin, Np), bf16)
        if upsample:
            xm = x_ref[...]                                        # (cp, h_in*w_in) f32
            prev = jnp.concatenate([xm[:, :w_in], xm[:, :-w_in]], axis=1)   # row j-1 (clamped)
            nxt = jnp.concatenate([xm[:, w_in:], xm[:, -w_in:]], axis=1)    # row j+1 (clamped)
            even = 0.25 * prev + 0.75 * xm                         # output row 2j
            odd = 0.75 * xm + 0.25 * nxt                           # output row 2j+1
            bup = bup_ref[...]                                     # (w_in, Wp)
            for r in range(H):
                j = r // 2
                src = (even if r % 2 == 0 else odd)[:, j * w_in:(j + 1) * w_in]
                row = jnp.dot(src, bup, preferred_element_type=f32)          # (cp, Wp)
                spad_ref[0:cp, r * Wp:(r + 1) * Wp] = row.astype(bf16)
        else:
            for r in range(H):
                spad_ref[0:cp, r * Wp + PL:r * Wp + PL + W] = (
                    x_ref[:, r * W:(r + 1) * W].astype(bf16))
        if with_skip:
            for r in range(H):
                spad_ref[cp:cin, r * Wp + PL:r * Wp + PL + W] = (
                    skip_ref[:, r * W:(r + 1) * W].astype(bf16))

        # ---- conv_1x1_1 + bn1 (mask forces the column halos back to exact zero) ----
        x0 = jnp.dot(w1_ref[...], spad_ref[...], preferred_element_type=f32)
        x0 = (x0 * s1_ref[...] + b1_ref[...]) * mask               # (cout, Np) f32

        # ---- dilated 3x3 convs: zero-padded flat scratch, 9 contiguous flat taps ----
        xpad_ref[:, 0:PT * Wp] = jnp.zeros((cout, PT * Wp), bf16)          # top halo rows
        xpad_ref[:, (PT + H) * Wp:(PT + H + PB) * Wp] = jnp.zeros((cout, PB * Wp), bf16)
        xpad_ref[:, PT * Wp:PT * Wp + Np] = x0.astype(bf16)

        def dconv(wd_ref, s_ref, b_ref, dil):
            taps = []
            for ky in range(3):
                for kx in range(3):
                    start = (PT + (ky - 1) * dil) * Wp + (kx - 1) * dil
                    taps.append(xpad_ref[:, start:start + Np])
            slab = jnp.concatenate(taps, axis=0)                   # (9*cout, Np) bf16, K axis
            y = jnp.dot(wd_ref[...], slab, preferred_element_type=f32)
            return y * s_ref[...] + b_ref[...]                     # (cout, Np) f32

        x1 = dconv(*dil_params[0], 1) * mask
        xpad_ref[:, PT * Wp:PT * Wp + Np] = x1.astype(bf16)
        x2 = dconv(*dil_params[1], 2) * mask
        xpad_ref[:, PT * Wp:PT * Wp + Np] = x2.astype(bf16)
        x3 = dconv(*dil_params[2], 3)

        # ---- conv_1x1_2 + bn2 over concat(x1,x2,x3): 3 summed dots + residual ----
        y = (jnp.dot(w2a_ref[...], x1.astype(bf16), preferred_element_type=f32)
             + jnp.dot(w2b_ref[...], x2.astype(bf16), preferred_element_type=f32)
             + jnp.dot(w2c_ref[...], x3.astype(bf16), preferred_element_type=f32))
        out = y * s2_ref[...] + b2_ref[...] + x0                   # residual after bn2

        # ---- optional fused final 1x1 conv (bias, no BN) ----
        if cf is not None:
            out = jnp.dot(wf_ref[...], out.astype(bf16),
                          preferred_element_type=f32) + bfin_ref[...]

        # ---- strip column halo (+ optional 2x2 avg pool) and store lane-dense ----
        if pool:
            pmat = pool_ref[...]                                   # (2*Wp, Wo) f32
            for i in range(Ho):
                seg = out[:, (2 * i) * Wp:(2 * i + 2) * Wp]        # (co, 2*Wp)
                o_ref[:, i * Wo:(i + 1) * Wo] = jnp.dot(
                    seg, pmat, preferred_element_type=f32).astype(o_ref.dtype)
        else:
            for r in range(H):
                o_ref[:, r * Wo:(r + 1) * Wo] = out[
                    :, r * Wp + PL:r * Wp + PL + W].astype(o_ref.dtype)

    return kernel


def drb_forward(x, h_in, w_in, p, *, skip=None, upsample=False, pool=False,
                final_w=None, final_b=None):
    """One fused DilatedResidualBlock pallas_call.

    x   : (N, cp, h_in*w_in) f32, flat NCHW (pre-upsample resolution if upsample).
    skip: optional (N, cs, H*W) f32, flat, at the post-upsample resolution.
    Returns (N, co, Ho*Wo) f32, flat.
    """
    N, cp, hw_in = x.shape
    assert hw_in == h_in * w_in
    H, W = (2 * h_in, 2 * w_in) if upsample else (h_in, w_in)
    assert (not pool) or (H % 2 == 0 and W % 2 == 0)
    cs = skip.shape[1] if skip is not None else 0
    cout = p["s1"].shape[0]
    cf = final_w.shape[0] if final_w is not None else None
    co = cf if cf is not None else cout
    Ho, Wo = (H // 2, W // 2) if pool else (H, W)
    Wp = W + PL + PR
    Hp = H + PT + PB
    Np = H * Wp

    kernel = _make_drb_kernel(h_in, w_in, H, W, cp, cs, cout, cf,
                              upsample=upsample, pool=pool,
                              with_skip=skip is not None)

    def fullspec(a):
        return pl.BlockSpec(a.shape, lambda b, _n=a.ndim: (0,) * _n)

    args = [x]
    in_specs = [pl.BlockSpec((None, cp, hw_in), lambda b: (b, 0, 0))]
    if skip is not None:
        assert skip.shape == (N, cs, H * W)
        args.append(skip)
        in_specs.append(pl.BlockSpec((None, cs, H * W), lambda b: (b, 0, 0)))

    params = [_make_col_mask(H, W, Wp)]
    if upsample:
        params.append(_make_upsample_mat(w_in, Wp))
    if pool:
        params.append(_make_pool_mat(W, Wp))
    params += [p["w1"], p["s1"], p["b1"],
               p["wd1"], p["sd1"], p["bd1"],
               p["wd2"], p["sd2"], p["bd2"],
               p["wd3"], p["sd3"], p["bd3"],
               p["w2a"], p["w2b"], p["w2c"], p["s2"], p["b2"]]
    if final_w is not None:
        params += [final_w, final_b]
    for a in params:
        args.append(a)
        in_specs.append(fullspec(a))

    return pl.pallas_call(
        kernel,
        out_shape=jax.ShapeDtypeStruct((N, co, Ho * Wo), x.dtype),
        grid=(N,),
        in_specs=in_specs,
        out_specs=pl.BlockSpec((None, co, Ho * Wo), lambda b: (b, 0, 0)),
        scratch_shapes=[pltpu.VMEM((cp + cs, Np), jnp.bfloat16),     # stem staging
                        pltpu.VMEM((cout, Hp * Wp), jnp.bfloat16)],  # dconv padded input
        compiler_params=pltpu.CompilerParams(dimension_semantics=("parallel",)),
    )(*args)


# ----------------------------------------------------------------------------
# Parameters (BN folded to scale/bias; conv weights channel-major bf16)
# ----------------------------------------------------------------------------
def make_conv_w(key, cin, cout, ksize):
    fan_in = ksize * ksize * cin
    # (cout, taps*cin) with columns ordered tap-major, cin-minor (matches the slab).
    return jax.random.normal(key, (cout, ksize * ksize * cin), jnp.float32) * fan_in ** -0.5


def make_bn(key, c):
    k1, k2, k3, k4 = jax.random.split(key, 4)
    gamma = 1.0 + 0.1 * jax.random.normal(k1, (c,), jnp.float32)
    beta = 0.1 * jax.random.normal(k2, (c,), jnp.float32)
    mean = 0.1 * jax.random.normal(k3, (c,), jnp.float32)
    var = 1.0 + 0.1 * jnp.abs(jax.random.normal(k4, (c,), jnp.float32))
    scale = gamma / jnp.sqrt(var + BN_EPS)
    bias = beta - mean * scale
    return scale.reshape(c, 1), bias.reshape(c, 1)


def make_drb_params(key, cin, cout):
    k = jax.random.split(key, 10)
    bf16 = jnp.bfloat16
    p = {}
    p["w1"] = make_conv_w(k[0], cin, cout, 1).astype(bf16)        # (cout, cin): [main | skip] cols
    p["s1"], p["b1"] = make_bn(k[1], cout)
    p["wd1"] = make_conv_w(k[2], cout, cout, 3).astype(bf16)      # (cout, 9*cout)
    p["sd1"], p["bd1"] = make_bn(k[3], cout)
    p["wd2"] = make_conv_w(k[4], cout, cout, 3).astype(bf16)
    p["sd2"], p["bd2"] = make_bn(k[5], cout)
    p["wd3"] = make_conv_w(k[6], cout, cout, 3).astype(bf16)
    p["sd3"], p["bd3"] = make_bn(k[7], cout)
    w2 = make_conv_w(k[8], cout * 3, cout, 1).astype(bf16)        # (cout, 3*cout)
    p["w2a"], p["w2b"], p["w2c"] = w2[:, :cout], w2[:, cout:2 * cout], w2[:, 2 * cout:]
    p["s2"], p["b2"] = make_bn(k[9], cout)
    return p


# ----------------------------------------------------------------------------
# DRNet
# ----------------------------------------------------------------------------
class DRNetPallas:
    def __init__(self, model_cfg, input_channels, key):
        down_filters = model_cfg["DOWNSAMPLE_FILTERS"]
        up_filters = model_cfg["UPSAMPLE_FILTERS"]
        self.use_pool = model_cfg["USE_POOL"]
        self.use_interp = model_cfg["USE_INTERPOLATE"]
        self.num_rv_features = model_cfg["FILTERS"][-1]

        keys = jax.random.split(key, len(down_filters) + len(up_filters) + 1)
        c_in = [input_channels, *down_filters[:-1]]
        self.down_params = [make_drb_params(keys[i], c_in[i], down_filters[i])
                            for i in range(len(down_filters))]
        c_in = [down_filters[-1], *up_filters[:-1]]
        self.up_params = [make_drb_params(keys[len(down_filters) + i], c_in[i] * 2, up_filters[i])
                          for i in range(len(up_filters))]
        k1, k2 = jax.random.split(keys[-1])
        # final conv_1x1 has a bias and no BN; fused into the last up block's kernel.
        self.final_w = make_conv_w(k1, up_filters[-1], self.num_rv_features, 1).astype(jnp.bfloat16)
        self.final_b = (0.01 * jax.random.normal(
            k2, (self.num_rv_features,), jnp.float32)).reshape(-1, 1)

    def __call__(self, batch_dict):
        x = batch_dict["range_image"]                 # (N, C, H, W) NCHW, like PyTorch
        N, C, H0, W0 = x.shape
        xf = x.reshape(N, C, H0 * W0)                 # lane-dense flat spatial layout
        h, w = H0, W0
        skips = []
        for i, p in enumerate(self.down_params):
            xf = drb_forward(xf, h, w, p, pool=self.use_pool[i])
            if self.use_pool[i]:
                h, w = h // 2, w // 2
            skips.append((xf, h, w))
        n_up = len(self.up_params)
        for i, p in enumerate(self.up_params):
            last = i == n_up - 1
            sk, sh, sw = skips[-i - 2]
            if self.use_interp[i]:
                assert (2 * h, 2 * w) == (sh, sw)
            xf = drb_forward(xf, h, w, p, skip=sk, upsample=self.use_interp[i],
                             final_w=self.final_w if last else None,
                             final_b=self.final_b if last else None)
            if self.use_interp[i]:
                h, w = 2 * h, 2 * w
        co = self.num_rv_features
        range_img = xf.reshape(N, co, h, w)           # NCHW, matches the PyTorch conv output

        # TODO(synk): range_convertor.get_range_features is an external dependency with
        # unspecified semantics; approximated as a per-point nearest-neighbor gather of
        # range-image features (points carry [batch_idx, row, col, intensity]).
        pts = batch_dict["colored_points"]
        b = pts[:, 0].astype(jnp.int32)
        r = jnp.clip(pts[:, 1].astype(jnp.int32), 0, h - 1)
        c = jnp.clip(pts[:, 2].astype(jnp.int32), 0, w - 1)
        batch_dict["rv_features"] = range_img[b, :, r, c]          # (P, co)
        batch_dict["range_image_features"] = range_img
        return batch_dict


# ----------------------------------------------------------------------------
# Demo
# ----------------------------------------------------------------------------
if __name__ == "__main__":
    key = jax.random.PRNGKey(0)
    kimg, kpts, kparams = jax.random.split(key, 3)

    N, C, H, W = 2, 4, 16, 16
    range_image = jax.random.normal(kimg, (N, C, H, W), jnp.float32)   # NCHW, like PyTorch

    model_cfg = dict(
        DOWNSAMPLE_STRIDES=[2, 2, 2],
        DOWNSAMPLE_FILTERS=[8, 16, 16],
        USE_POOL=[True, True, True],
        UPSAMPLE_STRIDES=[2, 2],
        UPSAMPLE_FILTERS=[8, 8],
        USE_INTERPOLATE=[True, True],
        FILTERS=[8],
    )
    net = DRNetPallas(model_cfg, C, kparams)

    # Points grouped by batch index; pixel coords in the final 8x8 range image.
    pts_per_batch = 6
    kr, kc, ki = jax.random.split(kpts, 3)
    rows = jax.random.randint(kr, (N * pts_per_batch,), 0, 8)
    cols = jax.random.randint(kc, (N * pts_per_batch,), 0, 8)
    inten = jax.random.uniform(ki, (N * pts_per_batch,))
    bidx = jnp.repeat(jnp.arange(N), pts_per_batch)
    colored_points = jnp.stack(
        [bidx.astype(jnp.float32), rows.astype(jnp.float32),
         cols.astype(jnp.float32), inten], axis=1)

    batch_dict = {
        "colored_points": colored_points,
        "range_image": range_image,
        "batch_size": N,
    }
    out = net(batch_dict)
    jax.block_until_ready(out["rv_features"])
    jax.block_until_ready(out["range_image_features"])
    assert out["rv_features"].shape == (N * pts_per_batch, model_cfg["FILTERS"][-1])
    assert out["range_image_features"].shape == (N, model_cfg["FILTERS"][-1], 8, 8)
    print("KERNEL_OK")
</pallas_src>

<mosaic_0001>
module attributes {stable_mosaic.version = 11 : i64} {
  func.func @kernel(%arg0: i32, %arg1: memref<1x4x256xf32, #tpu.memory_space<vmem>>, %arg2: memref<1x384xf32, #tpu.memory_space<vmem>>, %arg3: memref<48x8xf32, #tpu.memory_space<vmem>>, %arg4: memref<8x4xbf16, #tpu.memory_space<vmem>>, %arg5: memref<8x1xf32, #tpu.memory_space<vmem>>, %arg6: memref<8x1xf32, #tpu.memory_space<vmem>>, %arg7: memref<8x72xbf16, #tpu.memory_space<vmem>>, %arg8: memref<8x1xf32, #tpu.memory_space<vmem>>, %arg9: memref<8x1xf32, #tpu.memory_space<vmem>>, %arg10: memref<8x72xbf16, #tpu.memory_space<vmem>>, %arg11: memref<8x1xf32, #tpu.memory_space<vmem>>, %arg12: memref<8x1xf32, #tpu.memory_space<vmem>>, %arg13: memref<8x72xbf16, #tpu.memory_space<vmem>>, %arg14: memref<8x1xf32, #tpu.memory_space<vmem>>, %arg15: memref<8x1xf32, #tpu.memory_space<vmem>>, %arg16: memref<8x8xbf16, #tpu.memory_space<vmem>>, %arg17: memref<8x8xbf16, #tpu.memory_space<vmem>>, %arg18: memref<8x8xbf16, #tpu.memory_space<vmem>>, %arg19: memref<8x1xf32, #tpu.memory_space<vmem>>, %arg20: memref<8x1xf32, #tpu.memory_space<vmem>>, %arg21: memref<1x8x64xf32, #tpu.memory_space<vmem>>, %arg22: memref<4x384xbf16, #tpu.memory_space<vmem>>, %arg23: memref<8x576xbf16, #tpu.memory_space<vmem>>) attributes {dimension_semantics = [#tpu.dimension_semantics<parallel>], iteration_bounds = array<i64: 2>, scalar_prefetch = 0 : i64, scratch_operands = 2 : i64, tpu.core_type = #tpu.core_type<tc>, window_params = [{transform_indices = @transform_0, window_bounds = array<i64: 1, 4, 256>}, {pipeline_mode = #tpu.pipeline_mode<synchronous>, transform_indices = @transform_1, window_bounds = array<i64: 1, 384>}, {pipeline_mode = #tpu.pipeline_mode<synchronous>, transform_indices = @transform_2, window_bounds = array<i64: 48, 8>}, {pipeline_mode = #tpu.pipeline_mode<synchronous>, transform_indices = @transform_3, window_bounds = array<i64: 8, 4>}, {pipeline_mode = #tpu.pipeline_mode<synchronous>, transform_indices = @transform_4, window_bounds = array<i64: 8, 1>}, {pipeline_mode = #tpu.pipeline_mode<synchronous>, transform_indices = @transform_5, window_bounds = array<i64: 8, 1>}, {pipeline_mode = #tpu.pipeline_mode<synchronous>, transform_indices = @transform_6, window_bounds = array<i64: 8, 72>}, {pipeline_mode = #tpu.pipeline_mode<synchronous>, transform_indices = @transform_7, window_bounds = array<i64: 8, 1>}, {pipeline_mode = #tpu.pipeline_mode<synchronous>, transform_indices = @transform_8, window_bounds = array<i64: 8, 1>}, {pipeline_mode = #tpu.pipeline_mode<synchronous>, transform_indices = @transform_9, window_bounds = array<i64: 8, 72>}, {pipeline_mode = #tpu.pipeline_mode<synchronous>, transform_indices = @transform_10, window_bounds = array<i64: 8, 1>}, {pipeline_mode = #tpu.pipeline_mode<synchronous>, transform_indices = @transform_11, window_bounds = array<i64: 8, 1>}, {pipeline_mode = #tpu.pipeline_mode<synchronous>, transform_indices = @transform_12, window_bounds = array<i64: 8, 72>}, {pipeline_mode = #tpu.pipeline_mode<synchronous>, transform_indices = @transform_13, window_bounds = array<i64: 8, 1>}, {pipeline_mode = #tpu.pipeline_mode<synchronous>, transform_indices = @transform_14, window_bounds = array<i64: 8, 1>}, {pipeline_mode = #tpu.pipeline_mode<synchronous>, transform_indices = @transform_15, window_bounds = array<i64: 8, 8>}, {pipeline_mode = #tpu.pipeline_mode<synchronous>, transform_indices = @transform_16, window_bounds = array<i64: 8, 8>}, {pipeline_mode = #tpu.pipeline_mode<synchronous>, transform_indices = @transform_17, window_bounds = array<i64: 8, 8>}, {pipeline_mode = #tpu.pipeline_mode<synchronous>, transform_indices = @transform_18, window_bounds = array<i64: 8, 1>}, {pipeline_mode = #tpu.pipeline_mode<synchronous>, transform_indices = @transform_19, window_bounds = array<i64: 8, 1>}, {transform_indices = @transform_20, window_bounds = array<i64: 1, 8, 64>}]} {
    %c0 = arith.constant 0 : index
    %c0_0 = arith.constant 0 : index
    %0 = vector.load %arg2[%c0, %c0_0] : memref<1x384xf32, #tpu.memory_space<vmem>>, vector<1x384xf32>
    %cst = arith.constant 0.000000e+00 : bf16
    %1 = vector.broadcast %cst : bf16 to vector<4x384xbf16>
    %c0_1 = arith.constant 0 : index
    %c0_2 = arith.constant 0 : index
    %2 = vector.load %arg22[%c0_1, %c0_2] : memref<4x384xbf16, #tpu.memory_space<vmem>>, vector<4x384xbf16>
    tpu.vector_store %arg22[%c0_1, %c0_2], %1 {strides = array<i32>} : memref<4x384xbf16, #tpu.memory_space<vmem>>, vector<4x384xbf16>,
    %c0_3 = arith.constant 0 : index
    %c0_4 = arith.constant 0 : index
    %c0_5 = arith.constant 0 : index
    %3 = vector.load %arg1[%c0_3, %c0_4, %c0_5] : memref<1x4x256xf32, #tpu.memory_space<vmem>>, vector<1x4x16xf32>
    %4 = vector.shape_cast %3 : vector<1x4x16xf32> to vector<4x16xf32>
    %5 = arith.truncf %4 : vector<4x16xf32> to vector<4x16xbf16>
    %c0_6 = arith.constant 0 : index
    %c4 = arith.constant 4 : index
    %6 = vector.load %arg22[%c0_6, %c4] : memref<4x384xbf16, #tpu.memory_space<vmem>>, vector<4x16xbf16>
    tpu.vector_store %arg22[%c0_6, %c4], %5 {strides = array<i32>} : memref<4x384xbf16, #tpu.memory_space<vmem>>, vector<4x16xbf16>,
    %c0_7 = arith.constant 0 : index
    %c0_8 = arith.constant 0 : index
    %c16 = arith.constant 16 : index
    %7 = vector.load %arg1[%c0_7, %c0_8, %c16] : memref<1x4x256xf32, #tpu.memory_space<vmem>>, vector<1x4x16xf32>
    %8 = vector.shape_cast %7 : vector<1x4x16xf32> to vector<4x16xf32>
    %9 = arith.truncf %8 : vector<4x16xf32> to vector<4x16xbf16>
    %c0_9 = arith.constant 0 : index
    %c28 = arith.constant 28 : index
    %10 = vector.load %arg22[%c0_9, %c28] : memref<4x384xbf16, #tpu.memory_space<vmem>>, vector<4x16xbf16>
    tpu.vector_store %arg22[%c0_9, %c28], %9 {strides = array<i32>} : memref<4x384xbf16, #tpu.memory_space<vmem>>, vector<4x16xbf16>,
    %c0_10 = arith.constant 0 : index
    %c0_11 = arith.constant 0 : index
    %c32 = arith.constant 32 : index
    %11 = vector.load %arg1[%c0_10, %c0_11, %c32] : memref<1x4x256xf32, #tpu.memory_space<vmem>>, vector<1x4x16xf32>
    %12 = vector.shape_cast %11 : vector<1x4x16xf32> to vector<4x16xf32>
    %13 = arith.truncf %12 : vector<4x16xf32> to vector<4x16xbf16>
    %c0_12 = arith.constant 0 : index
    %c52 = arith.constant 52 : index
    %14 = vector.load %arg22[%c0_12, %c52] : memref<4x384xbf16, #tpu.memory_space<vmem>>, vector<4x16xbf16>
    tpu.vector_store %arg22[%c0_12, %c52], %13 {strides = array<i32>} : memref<4x384xbf16, #tpu.memory_space<vmem>>, vector<4x16xbf16>,
    %c0_13 = arith.constant 0 : index
    %c0_14 = arith.constant 0 : index
    %c48 = arith.constant 48 : index
    %15 = vector.load %arg1[%c0_13, %c0_14, %c48] : memref<1x4x256xf32, #tpu.memory_space<vmem>>, vector<1x4x16xf32>
    %16 = vector.shape_cast %15 : vector<1x4x16xf32> to vector<4x16xf32>
    %17 = arith.truncf %16 : vector<4x16xf32> to vector<4x16xbf16>
    %c0_15 = arith.constant 0 : index
    %c76 = arith.constant 76 : index
    %18 = vector.load %arg22[%c0_15, %c76] : memref<4x384xbf16, #tpu.memory_space<vmem>>, vector<4x16xbf16>
    tpu.vector_store %arg22[%c0_15, %c76], %17 {strides = array<i32>} : memref<4x384xbf16, #tpu.memory_space<vmem>>, vector<4x16xbf16>,
    %c0_16 = arith.constant 0 : index
    %c0_17 = arith.constant 0 : index
    %c64 = arith.constant 64 : index
    %19 = vector.load %arg1[%c0_16, %c0_17, %c64] : memref<1x4x256xf32, #tpu.memory_space<vmem>>, vector<1x4x16xf32>
    %20 = vector.shape_cast %19 : vector<1x4x16xf32> to vector<4x16xf32>
    %21 = arith.truncf %20 : vector<4x16xf32> to vector<4x16xbf16>
    %c0_18 = arith.constant 0 : index
    %c100 = arith.constant 100 : index
    %22 = vector.load %arg22[%c0_18, %c100] : memref<4x384xbf16, #tpu.memory_space<vmem>>, vector<4x16xbf16>
    tpu.vector_store %arg22[%c0_18, %c100], %21 {strides = array<i32>} : memref<4x384xbf16, #tpu.memory_space<vmem>>, vector<4x16xbf16>,
    %c0_19 = arith.constant 0 : index
    %c0_20 = arith.constant 0 : index
    %c80 = arith.constant 80 : index
    %23 = vector.load %arg1[%c0_19, %c0_20, %c80] : memref<1x4x256xf32, #tpu.memory_space<vmem>>, vector<1x4x16xf32>
    %24 = vector.shape_cast %23 : vector<1x4x16xf32> to vector<4x16xf32>
    %25 = arith.truncf %24 : vector<4x16xf32> to vector<4x16xbf16>
    %c0_21 = arith.constant 0 : index
    %c124 = arith.constant 124 : index
    %26 = vector.load %arg22[%c0_21, %c124] : memref<4x384xbf16, #tpu.memory_space<vmem>>, vector<4x16xbf16>
    tpu.vector_store %arg22[%c0_21, %c124], %25 {strides = array<i32>} : memref<4x384xbf16, #tpu.memory_space<vmem>>, vector<4x16xbf16>,
    %c0_22 = arith.constant 0 : index
    %c0_23 = arith.constant 0 : index
    %c96 = arith.constant 96 : index
    %27 = vector.load %arg1[%c0_22, %c0_23, %c96] : memref<1x4x256xf32, #tpu.memory_space<vmem>>, vector<1x4x16xf32>
    %28 = vector.shape_cast %27 : vector<1x4x16xf32> to vector<4x16xf32>
    %29 = arith.truncf %28 : vector<4x16xf32> to vector<4x16xbf16>
    %c0_24 = arith.constant 0 : index
    %c148 = arith.constant 148 : index
    %30 = vector.load %arg22[%c0_24, %c148] : memref<4x384xbf16, #tpu.memory_space<vmem>>, vector<4x16xbf16>
    tpu.vector_store %arg22[%c0_24, %c148], %29 {strides = array<i32>} : memref<4x384xbf16, #tpu.memory_space<vmem>>, vector<4x16xbf16>,
    %c0_25 = arith.constant 0 : index
    %c0_26 = arith.constant 0 : index
    %c112 = arith.constant 112 : index
    %31 = vector.load %arg1[%c0_25, %c0_26, %c112] : memref<1x4x256xf32, #tpu.memory_space<vmem>>, vector<1x4x16xf32>
    %32 = vector.shape_cast %31 : vector<1x4x16xf32> to vector<4x16xf32>
    %33 = arith.truncf %32 : vector<4x16xf32> to vector<4x16xbf16>
    %c0_27 = arith.constant 0 : index
    %c172 = arith.constant 172 : index
    %34 = vector.load %arg22[%c0_27, %c172] : memref<4x384xbf16, #tpu.memory_space<vmem>>, vector<4x16xbf16>
    tpu.vector_store %arg22[%c0_27, %c172], %33 {strides = array<i32>} : memref<4x384xbf16, #tpu.memory_space<vmem>>, vector<4x16xbf16>,
    %c0_28 = arith.constant 0 : index
    %c0_29 = arith.constant 0 : index
    %c128 = arith.constant 128 : index
    %35 = vector.load %arg1[%c0_28, %c0_29, %c128] : memref<1x4x256xf32, #tpu.memory_space<vmem>>, vector<1x4x16xf32>
    %36 = vector.shape_cast %35 : vector<1x4x16xf32> to vector<4x16xf32>
    %37 = arith.truncf %36 : vector<4x16xf32> to vector<4x16xbf16>
    %c0_30 = arith.constant 0 : index
    %c196 = arith.constant 196 : index
    %38 = vector.load %arg22[%c0_30, %c196] : memref<4x384xbf16, #tpu.memory_space<vmem>>, vector<4x16xbf16>
    tpu.vector_store %arg22[%c0_30, %c196], %37 {strides = array<i32>} : memref<4x384xbf16, #tpu.memory_space<vmem>>, vector<4x16xbf16>,
    %c0_31 = arith.constant 0 : index
    %c0_32 = arith.constant 0 : index
    %c144 = arith.constant 144 : index
    %39 = vector.load %arg1[%c0_31, %c0_32, %c144] : memref<1x4x256xf32, #tpu.memory_space<vmem>>, vector<1x4x16xf32>
    %40 = vector.shape_cast %39 : vector<1x4x16xf32> to vector<4x16xf32>
    %41 = arith.truncf %40 : vector<4x16xf32> to vector<4x16xbf16>
    %c0_33 = arith.constant 0 : index
    %c220 = arith.constant 220 : index
    %42 = vector.load %arg22[%c0_33, %c220] : memref<4x384xbf16, #tpu.memory_space<vmem>>, vector<4x16xbf16>
    tpu.vector_store %arg22[%c0_33, %c220], %41 {strides = array<i32>} : memref<4x384xbf16, #tpu.memory_space<vmem>>, vector<4x16xbf16>,
    %c0_34 = arith.constant 0 : index
    %c0_35 = arith.constant 0 : index
    %c160 = arith.constant 160 : index
    %43 = vector.load %arg1[%c0_34, %c0_35, %c160] : memref<1x4x256xf32, #tpu.memory_space<vmem>>, vector<1x4x16xf32>
    %44 = vector.shape_cast %43 : vector<1x4x16xf32> to vector<4x16xf32>
    %45 = arith.truncf %44 : vector<4x16xf32> to vector<4x16xbf16>
    %c0_36 = arith.constant 0 : index
    %c244 = arith.constant 244 : index
    %46 = vector.load %arg22[%c0_36, %c244] : memref<4x384xbf16, #tpu.memory_space<vmem>>, vector<4x16xbf16>
    tpu.vector_store %arg22[%c0_36, %c244], %45 {strides = array<i32>} : memref<4x384xbf16, #tpu.memory_space<vmem>>, vector<4x16xbf16>,
    %c0_37 = arith.constant 0 : index
    %c0_38 = arith.constant 0 : index
    %c176 = arith.constant 176 : index
    %47 = vector.load %arg1[%c0_37, %c0_38, %c176] : memref<1x4x256xf32, #tpu.memory_space<vmem>>, vector<1x4x16xf32>
    %48 = vector.shape_cast %47 : vector<1x4x16xf32> to vector<4x16xf32>
    %49 = arith.truncf %48 : vector<4x16xf32> to vector<4x16xbf16>
    %c0_39 = arith.constant 0 : index
    %c268 = arith.constant 268 : index
    %50 = vector.load %arg22[%c0_39, %c268] : memref<4x384xbf16, #tpu.memory_space<vmem>>, vector<4x16xbf16>
    tpu.vector_store %arg22[%c0_39, %c268], %49 {strides = array<i32>} : memref<4x384xbf16, #tpu.memory_space<vmem>>, vector<4x16xbf16>,
    %c0_40 = arith.constant 0 : index
    %c0_41 = arith.constant 0 : index
    %c192 = arith.constant 192 : index
    %51 = vector.load %arg1[%c0_40, %c0_41, %c192] : memref<1x4x256xf32, #tpu.memory_space<vmem>>, vector<1x4x16xf32>
    %52 = vector.shape_cast %51 : vector<1x4x16xf32> to vector<4x16xf32>
    %53 = arith.truncf %52 : vector<4x16xf32> to vector<4x16xbf16>
    %c0_42 = arith.constant 0 : index
    %c292 = arith.constant 292 : index
    %54 = vector.load %arg22[%c0_42, %c292] : memref<4x384xbf16, #tpu.memory_space<vmem>>, vector<4x16xbf16>
    tpu.vector_store %arg22[%c0_42, %c292], %53 {strides = array<i32>} : memref<4x384xbf16, #tpu.memory_space<vmem>>, vector<4x16xbf16>,
    %c0_43 = arith.constant 0 : index
    %c0_44 = arith.constant 0 : index
    %c208 = arith.constant 208 : index
    %55 = vector.load %arg1[%c0_43, %c0_44, %c208] : memref<1x4x256xf32, #tpu.memory_space<vmem>>, vector<1x4x16xf32>
    %56 = vector.shape_cast %55 : vector<1x4x16xf32> to vector<4x16xf32>
    %57 = arith.truncf %56 : vector<4x16xf32> to vector<4x16xbf16>
    %c0_45 = arith.constant 0 : index
    %c316 = arith.constant 316 : index
    %58 = vector.load %arg22[%c0_45, %c316] : memref<4x384xbf16, #tpu.memory_space<vmem>>, vector<4x16xbf16>
    tpu.vector_store %arg22[%c0_45, %c316], %57 {strides = array<i32>} : memref<4x384xbf16, #tpu.memory_space<vmem>>, vector<4x16xbf16>,
    %c0_46 = arith.constant 0 : index
    %c0_47 = arith.constant 0 : index
    %c224 = arith.constant 224 : index
    %59 = vector.load %arg1[%c0_46, %c0_47, %c224] : memref<1x4x256xf32, #tpu.memory_space<vmem>>, vector<1x4x16xf32>
    %60 = vector.shape_cast %59 : vector<1x4x16xf32> to vector<4x16xf32>
    %61 = arith.truncf %60 : vector<4x16xf32> to vector<4x16xbf16>
    %c0_48 = arith.constant 0 : index
    %c340 = arith.constant 340 : index
    %62 = vector.load %arg22[%c0_48, %c340] : memref<4x384xbf16, #tpu.memory_space<vmem>>, vector<4x16xbf16>
    tpu.vector_store %arg22[%c0_48, %c340], %61 {strides = array<i32>} : memref<4x384xbf16, #tpu.memory_space<vmem>>, vector<4x16xbf16>,
    %c0_49 = arith.constant 0 : index
    %c0_50 = arith.constant 0 : index
    %c240 = arith.constant 240 : index
    %63 = vector.load %arg1[%c0_49, %c0_50, %c240] : memref<1x4x256xf32, #tpu.memory_space<vmem>>, vector<1x4x16xf32>
    %64 = vector.shape_cast %63 : vector<1x4x16xf32> to vector<4x16xf32>
    %65 = arith.truncf %64 : vector<4x16xf32> to vector<4x16xbf16>
    %c0_51 = arith.constant 0 : index
    %c364 = arith.constant 364 : index
    %66 = vector.load %arg22[%c0_51, %c364] : memref<4x384xbf16, #tpu.memory_space<vmem>>, vector<4x16xbf16>
    tpu.vector_store %arg22[%c0_51, %c364], %65 {strides = array<i32>} : memref<4x384xbf16, #tpu.memory_space<vmem>>, vector<4x16xbf16>,
    %c0_52 = arith.constant 0 : index
    %c0_53 = arith.constant 0 : index
    %67 = vector.load %arg4[%c0_52, %c0_53] : memref<8x4xbf16, #tpu.memory_space<vmem>>, vector<8x4xbf16>
    %c0_54 = arith.constant 0 : index
    %c0_55 = arith.constant 0 : index
    %68 = vector.load %arg22[%c0_54, %c0_55] : memref<4x384xbf16, #tpu.memory_space<vmem>>, vector<4x384xbf16>
    %cst_56 = arith.constant dense<0.000000e+00> : vector<8x384xf32>
    %69 = tpu.matmul %67, %68, %cst_56 {dimension_numbers = #tpu.dot_dimension_numbers<[1], [0], [0], [1], [0, 0, 1, 1], [], []>} : vector<8x4xbf16>, vector<4x384xbf16>, vector<8x384xf32> -> vector<8x384xf32>
    %c0_57 = arith.constant 0 : index
    %c0_58 = arith.constant 0 : index
    %70 = vector.load %arg5[%c0_57, %c0_58] : memref<8x1xf32, #tpu.memory_space<vmem>>, vector<8x1xf32>
    %71 = vector.broadcast %70 : vector<8x1xf32> to vector<8x384xf32>
    %72 = arith.mulf %69, %71 : vector<8x384xf32>
    %c0_59 = arith.constant 0 : index
    %c0_60 = arith.constant 0 : index
    %73 = vector.load %arg6[%c0_59, %c0_60] : memref<8x1xf32, #tpu.memory_space<vmem>>, vector<8x1xf32>
    %74 = vector.broadcast %73 : vector<8x1xf32> to vector<8x384xf32>
    %75 = arith.addf %72, %74 : vector<8x384xf32>
    %76 = vector.broadcast %0 : vector<1x384xf32> to vector<8x384xf32>
    %77 = arith.mulf %75, %76 : vector<8x384xf32>
    %cst_61 = arith.constant 0.000000e+00 : bf16
    %78 = vector.broadcast %cst_61 : bf16 to vector<8x96xbf16>
    %c0_62 = arith.constant 0 : index
    %c0_63 = arith.constant 0 : index
    %79 = vector.load %arg23[%c0_62, %c0_63] : memref<8x576xbf16, #tpu.memory_space<vmem>>, vector<8x96xbf16>
    tpu.vector_store %arg23[%c0_62, %c0_63], %78 {strides = array<i32>} : memref<8x576xbf16, #tpu.memory_space<vmem>>, vector<8x96xbf16>,
    %cst_64 = arith.constant 0.000000e+00 : bf16
    %80 = vector.broadcast %cst_64 : bf16 to vector<8x96xbf16>
    %c0_65 = arith.constant 0 : index
    %c480 = arith.constant 480 : index
    %81 = vector.load %arg23[%c0_65, %c480] : memref<8x576xbf16, #tpu.memory_space<vmem>>, vector<8x96xbf16>
    tpu.vector_store %arg23[%c0_65, %c480], %80 {strides = array<i32>} : memref<8x576xbf16, #tpu.memory_space<vmem>>, vector<8x96xbf16>,
    %82 = arith.truncf %77 : vector<8x384xf32> to vector<8x384xbf16>
    %c0_66 = arith.constant 0 : index
    %c96_67 = arith.constant 96 : index
    %83 = vector.load %arg23[%c0_66, %c96_67] : memref<8x576xbf16, #tpu.memory_space<vmem>>, vector<8x384xbf16>
    tpu.vector_store %arg23[%c0_66, %c96_67], %82 {strides = array<i32>} : memref<8x576xbf16, #tpu.memory_space<vmem>>, vector<8x384xbf16>,
    %c0_68 = arith.constant 0 : index
    %c71 = arith.constant 71 : index
    %84 = vector.load %arg23[%c0_68, %c71] : memref<8x576xbf16, #tpu.memory_space<vmem>>, vector<8x384xbf16>
    %c0_69 = arith.constant 0 : index
    %c72 = arith.constant 72 : index
    %85 = vector.load %arg23[%c0_69, %c72] : memref<8x576xbf16, #tpu.memory_space<vmem>>, vector<8x384xbf16>
    %c0_70 = arith.constant 0 : index
    %c73 = arith.constant 73 : index
    %86 = vector.load %arg23[%c0_70, %c73] : memref<8x576xbf16, #tpu.memory_space<vmem>>, vector<8x384xbf16>
    %c0_71 = arith.constant 0 : index
    %c95 = arith.constant 95 : index
    %87 = vector.load %arg23[%c0_71, %c95] : memref<8x576xbf16, #tpu.memory_space<vmem>>, vector<8x384xbf16>
    %c0_72 = arith.constant 0 : index
    %c96_73 = arith.constant 96 : index
    %88 = vector.load %arg23[%c0_72, %c96_73] : memref<8x576xbf16, #tpu.memory_space<vmem>>, vector<8x384xbf16>
    %c0_74 = arith.constant 0 : index
    %c97 = arith.constant 97 : index
    %89 = vector.load %arg23[%c0_74, %c97] : memref<8x576xbf16, #tpu.memory_space<vmem>>, vector<8x384xbf16>
    %c0_75 = arith.constant 0 : index
    %c119 = arith.constant 119 : index
    %90 = vector.load %arg23[%c0_75, %c119] : memref<8x576xbf16, #tpu.memory_space<vmem>>, vector<8x384xbf16>
    %c0_76 = arith.constant 0 : index
    %c120 = arith.constant 120 : index
    %91 = vector.load %arg23[%c0_76, %c120] : memref<8x576xbf16, #tpu.memory_space<vmem>>, vector<8x384xbf16>
    %c0_77 = arith.constant 0 : index
    %c121 = arith.constant 121 : index
    %92 = vector.load %arg23[%c0_77, %c121] : memref<8x576xbf16, #tpu.memory_space<vmem>>, vector<8x384xbf16>
    %93 = tpu.concatenate %84, %85, %86, %87, %88, %89, %90, %91, %92 in 0 : vector<8x384xbf16>, vector<8x384xbf16>, vector<8x384xbf16>, vector<8x384xbf16>, vector<8x384xbf16>, vector<8x384xbf16>, vector<8x384xbf16>, vector<8x384xbf16>, vector<8x384xbf16> -> vector<72x384xbf16>
    %c0_78 = arith.constant 0 : index
    %c0_79 = arith.constant 0 : index
    %94 = vector.load %arg7[%c0_78, %c0_79] : memref<8x72xbf16, #tpu.memory_space<vmem>>, vector<8x72xbf16>
    %cst_80 = arith.constant dense<0.000000e+00> : vector<8x384xf32>
    %95 = tpu.matmul %94, %93, %cst_80 {dimension_numbers = #tpu.dot_dimension_numbers<[1], [0], [0], [1], [0, 0, 1, 1], [], []>} : vector<8x72xbf16>, vector<72x384xbf16>, vector<8x384xf32> -> vector<8x384xf32>
    %c0_81 = arith.constant 0 : index
    %c0_82 = arith.constant 0 : index
    %96 = vector.load %arg8[%c0_81, %c0_82] : memref<8x1xf32, #tpu.memory_space<vmem>>, vector<8x1xf32>
    %97 = vector.broadcast %96 : vector<8x1xf32> to vector<8x384xf32>
    %98 = arith.mulf %95, %97 : vector<8x384xf32>
    %c0_83 = arith.constant 0 : index
    %c0_84 = arith.constant 0 : index
    %99 = vector.load %arg9[%c0_83, %c0_84] : memref<8x1xf32, #tpu.memory_space<vmem>>, vector<8x1xf32>
    %100 = vector.broadcast %99 : vector<8x1xf32> to vector<8x384xf32>
    %101 = arith.addf %98, %100 : vector<8x384xf32>
    %102 = vector.broadcast %0 : vector<1x384xf32> to vector<8x384xf32>
    %103 = arith.mulf %101, %102 : vector<8x384xf32>
    %104 = arith.truncf %103 : vector<8x384xf32> to vector<8x384xbf16>
    %c0_85 = arith.constant 0 : index
    %c96_86 = arith.constant 96 : index
    %105 = vector.load %arg23[%c0_85, %c96_86] : memref<8x576xbf16, #tpu.memory_space<vmem>>, vector<8x384xbf16>
    tpu.vector_store %arg23[%c0_85, %c96_86], %104 {strides = array<i32>} : memref<8x576xbf16, #tpu.memory_space<vmem>>, vector<8x384xbf16>,
    %c0_87 = arith.constant 0 : index
    %c46 = arith.constant 46 : index
    %106 = vector.load %arg23[%c0_87, %c46] : memref<8x576xbf16, #tpu.memory_space<vmem>>, vector<8x384xbf16>
    %c0_88 = arith.constant 0 : index
    %c48_89 = arith.constant 48 : index
    %107 = vector.load %arg23[%c0_88, %c48_89] : memref<8x576xbf16, #tpu.memory_space<vmem>>, vector<8x384xbf16>
    %c0_90 = arith.constant 0 : index
    %c50 = arith.constant 50 : index
    %108 = vector.load %arg23[%c0_90, %c50] : memref<8x576xbf16, #tpu.memory_space<vmem>>, vector<8x384xbf16>
    %c0_91 = arith.constant 0 : index
    %c94 = arith.constant 94 : index
    %109 = vector.load %arg23[%c0_91, %c94] : memref<8x576xbf16, #tpu.memory_space<vmem>>, vector<8x384xbf16>
    %c0_92 = arith.constant 0 : index
    %c96_93 = arith.constant 96 : index
    %110 = vector.load %arg23[%c0_92, %c96_93] : memref<8x576xbf16, #tpu.memory_space<vmem>>, vector<8x384xbf16>
    %c0_94 = arith.constant 0 : index
    %c98 = arith.constant 98 : index
    %111 = vector.load %arg23[%c0_94, %c98] : memref<8x576xbf16, #tpu.memory_space<vmem>>, vector<8x384xbf16>
    %c0_95 = arith.constant 0 : index
    %c142 = arith.constant 142 : index
    %112 = vector.load %arg23[%c0_95, %c142] : memref<8x576xbf16, #tpu.memory_space<vmem>>, vector<8x384xbf16>
    %c0_96 = arith.constant 0 : index
    %c144_97 = arith.constant 144 : index
    %113 = vector.load %arg23[%c0_96, %c144_97] : memref<8x576xbf16, #tpu.memory_space<vmem>>, vector<8x384xbf16>
    %c0_98 = arith.constant 0 : index
    %c146 = arith.constant 146 : index
    %114 = vector.load %arg23[%c0_98, %c146] : memref<8x576xbf16, #tpu.memory_space<vmem>>, vector<8x384xbf16>
    %115 = tpu.concatenate %106, %107, %108, %109, %110, %111, %112, %113, %114 in 0 : vector<8x384xbf16>, vector<8x384xbf16>, vector<8x384xbf16>, vector<8x384xbf16>, vector<8x384xbf16>, vector<8x384xbf16>, vector<8x384xbf16>, vector<8x384xbf16>, vector<8x384xbf16> -> vector<72x384xbf16>
    %c0_99 = arith.constant 0 : index
    %c0_100 = arith.constant 0 : index
    %116 = vector.load %arg10[%c0_99, %c0_100] : memref<8x72xbf16, #tpu.memory_space<vmem>>, vector<8x72xbf16>
    %cst_101 = arith.constant dense<0.000000e+00> : vector<8x384xf32>
    %117 = tpu.matmul %116, %115, %cst_101 {dimension_numbers = #tpu.dot_dimension_numbers<[1], [0], [0], [1], [0, 0, 1, 1], [], []>} : vector<8x72xbf16>, vector<72x384xbf16>, vector<8x384xf32> -> vector<8x384xf32>
    %c0_102 = arith.constant 0 : index
    %c0_103 = arith.constant 0 : index
    %118 = vector.load %arg11[%c0_102, %c0_103] : memref<8x1xf32, #tpu.memory_space<vmem>>, vector<8x1xf32>
    %119 = vector.broadcast %118 : vector<8x1xf32> to vector<8x384xf32>
    %120 = arith.mulf %117, %119 : vector<8x384xf32>
    %c0_104 = arith.constant 0 : index
    %c0_105 = arith.constant 0 : index
    %121 = vector.load %arg12[%c0_104, %c0_105] : memref<8x1xf32, #tpu.memory_space<vmem>>, vector<8x1xf32>
    %122 = vector.broadcast %121 : vector<8x1xf32> to vector<8x384xf32>
    %123 = arith.addf %120, %122 : vector<8x384xf32>
    %124 = vector.broadcast %0 : vector<1x384xf32> to vector<8x384xf32>
    %125 = arith.mulf %123, %124 : vector<8x384xf32>
    %126 = arith.truncf %125 : vector<8x384xf32> to vector<8x384xbf16>
    %c0_106 = arith.constant 0 : index
    %c96_107 = arith.constant 96 : index
    %127 = vector.load %arg23[%c0_106, %c96_107] : memref<8x576xbf16, #tpu.memory_space<vmem>>, vector<8x384xbf16>
    tpu.vector_store %arg23[%c0_106, %c96_107], %126 {strides = array<i32>} : memref<8x576xbf16, #tpu.memory_space<vmem>>, vector<8x384xbf16>,
    %c0_108 = arith.constant 0 : index
    %c21 = arith.constant 21 : index
    %128 = vector.load %arg23[%c0_108, %c21] : memref<8x576xbf16, #tpu.memory_space<vmem>>, vector<8x384xbf16>
    %c0_109 = arith.constant 0 : index
    %c24 = arith.constant 24 : index
    %129 = vector.load %arg23[%c0_109, %c24] : memref<8x576xbf16, #tpu.memory_space<vmem>>, vector<8x384xbf16>
    %c0_110 = arith.constant 0 : index
    %c27 = arith.constant 27 : index
    %130 = vector.load %arg23[%c0_110, %c27] : memref<8x576xbf16, #tpu.memory_space<vmem>>, vector<8x384xbf16>
    %c0_111 = arith.constant 0 : index
    %c93 = arith.constant 93 : index
    %131 = vector.load %arg23[%c0_111, %c93] : memref<8x576xbf16, #tpu.memory_space<vmem>>, vector<8x384xbf16>
    %c0_112 = arith.constant 0 : index
    %c96_113 = arith.constant 96 : index
    %132 = vector.load %arg23[%c0_112, %c96_113] : memref<8x576xbf16, #tpu.memory_space<vmem>>, vector<8x384xbf16>
    %c0_114 = arith.constant 0 : index
    %c99 = arith.constant 99 : index
    %133 = vector.load %arg23[%c0_114, %c99] : memref<8x576xbf16, #tpu.memory_space<vmem>>, vector<8x384xbf16>
    %c0_115 = arith.constant 0 : index
    %c165 = arith.constant 165 : index
    %134 = vector.load %arg23[%c0_115, %c165] : memref<8x576xbf16, #tpu.memory_space<vmem>>, vector<8x384xbf16>
    %c0_116 = arith.constant 0 : index
    %c168 = arith.constant 168 : index
    %135 = vector.load %arg23[%c0_116, %c168] : memref<8x576xbf16, #tpu.memory_space<vmem>>, vector<8x384xbf16>
    %c0_117 = arith.constant 0 : index
    %c171 = arith.constant 171 : index
    %136 = vector.load %arg23[%c0_117, %c171] : memref<8x576xbf16, #tpu.memory_space<vmem>>, vector<8x384xbf16>
    %137 = tpu.concatenate %128, %129, %130, %131, %132, %133, %134, %135, %136 in 0 : vector<8x384xbf16>, vector<8x384xbf16>, vector<8x384xbf16>, vector<8x384xbf16>, vector<8x384xbf16>, vector<8x384xbf16>, vector<8x384xbf16>, vector<8x384xbf16>, vector<8x384xbf16> -> vector<72x384xbf16>
    %c0_118 = arith.constant 0 : index
    %c0_119 = arith.constant 0 : index
    %138 = vector.load %arg13[%c0_118, %c0_119] : memref<8x72xbf16, #tpu.memory_space<vmem>>, vector<8x72xbf16>
    %cst_120 = arith.constant dense<0.000000e+00> : vector<8x384xf32>
    %139 = tpu.matmul %138, %137, %cst_120 {dimension_numbers = #tpu.dot_dimension_numbers<[1], [0], [0], [1], [0, 0, 1, 1], [], []>} : vector<8x72xbf16>, vector<72x384xbf16>, vector<8x384xf32> -> vector<8x384xf32>
    %c0_121 = arith.constant 0 : index
    %c0_122 = arith.constant 0 : index
    %140 = vector.load %arg14[%c0_121, %c0_122] : memref<8x1xf32, #tpu.memory_space<vmem>>, vector<8x1xf32>
    %141 = vector.broadcast %140 : vector<8x1xf32> to vector<8x384xf32>
    %142 = arith.mulf %139, %141 : vector<8x384xf32>
    %c0_123 = arith.constant 0 : index
    %c0_124 = arith.constant 0 : index
    %143 = vector.load %arg15[%c0_123, %c0_124] : memref<8x1xf32, #tpu.memory_space<vmem>>, vector<8x1xf32>
    %144 = vector.broadcast %143 : vector<8x1xf32> to vector<8x384xf32>
    %145 = arith.addf %142, %144 : vector<8x384xf32>
    %c0_125 = arith.constant 0 : index
    %c0_126 = arith.constant 0 : index
    %146 = vector.load %arg16[%c0_125, %c0_126] : memref<8x8xbf16, #tpu.memory_space<vmem>>, vector<8x8xbf16>
    %147 = arith.truncf %103 : vector<8x384xf32> to vector<8x384xbf16>
    %cst_127 = arith.constant dense<0.000000e+00> : vector<8x384xf32>
    %148 = tpu.matmul %146, %147, %cst_127 {dimension_numbers = #tpu.dot_dimension_numbers<[1], [0], [0], [1], [0, 0, 1, 1], [], []>} : vector<8x8xbf16>, vector<8x384xbf16>, vector<8x384xf32> -> vector<8x384xf32>
    %c0_128 = arith.constant 0 : index
    %c0_129 = arith.constant 0 : index
    %149 = vector.load %arg17[%c0_128, %c0_129] : memref<8x8xbf16, #tpu.memory_space<vmem>>, vector<8x8xbf16>
    %150 = arith.truncf %125 : vector<8x384xf32> to vector<8x384xbf16>
    %cst_130 = arith.constant dense<0.000000e+00> : vector<8x384xf32>
    %151 = tpu.matmul %149, %150, %cst_130 {dimension_numbers = #tpu.dot_dimension_numbers<[1], [0], [0], [1], [0, 0, 1, 1], [], []>} : vector<8x8xbf16>, vector<8x384xbf16>, vector<8x384xf32> -> vector<8x384xf32>
    %152 = arith.addf %148, %151 : vector<8x384xf32>
    %c0_131 = arith.constant 0 : index
    %c0_132 = arith.constant 0 : index
    %153 = vector.load %arg18[%c0_131, %c0_132] : memref<8x8xbf16, #tpu.memory_space<vmem>>, vector<8x8xbf16>
    %154 = arith.truncf %145 : vector<8x384xf32> to vector<8x384xbf16>
    %cst_133 = arith.constant dense<0.000000e+00> : vector<8x384xf32>
    %155 = tpu.matmul %153, %154, %cst_133 {dimension_numbers = #tpu.dot_dimension_numbers<[1], [0], [0], [1], [0, 0, 1, 1], [], []>} : vector<8x8xbf16>, vector<8x384xbf16>, vector<8x384xf32> -> vector<8x384xf32>
    %156 = arith.addf %152, %155 : vector<8x384xf32>
    %c0_134 = arith.constant 0 : index
    %c0_135 = arith.constant 0 : index
    %157 = vector.load %arg19[%c0_134, %c0_135] : memref<8x1xf32, #tpu.memory_space<vmem>>, vector<8x1xf32>
    %158 = vector.broadcast %157 : vector<8x1xf32> to vector<8x384xf32>
    %159 = arith.mulf %156, %158 : vector<8x384xf32>
    %c0_136 = arith.constant 0 : index
    %c0_137 = arith.constant 0 : index
    %160 = vector.load %arg20[%c0_136, %c0_137] : memref<8x1xf32, #tpu.memory_space<vmem>>, vector<8x1xf32>
    %161 = vector.broadcast %160 : vector<8x1xf32> to vector<8x384xf32>
    %162 = arith.addf %159, %161 : vector<8x384xf32>
    %163 = arith.addf %162, %77 : vector<8x384xf32>
    %c0_138 = arith.constant 0 : index
    %c0_139 = arith.constant 0 : index
    %164 = vector.load %arg3[%c0_138, %c0_139] : memref<48x8xf32, #tpu.memory_space<vmem>>, vector<48x8xf32>
    %165 = vector.extract_strided_slice %163 {offsets = [0, 0], sizes = [8, 48], strides = [1, 1]} : vector<8x384xf32> to vector<8x48xf32>
    %cst_140 = arith.constant dense<0.000000e+00> : vector<8x8xf32>
    %166 = tpu.matmul %165, %164, %cst_140 {dimension_numbers = #tpu.dot_dimension_numbers<[1], [0], [0], [1], [0, 0, 1, 1], [], []>} : vector<8x48xf32>, vector<48x8xf32>, vector<8x8xf32> -> vector<8x8xf32>
    %c0_141 = arith.constant 0 : index
    %c0_142 = arith.constant 0 : index
    %c0_143 = arith.constant 0 : index
    %167 = vector.load %arg21[%c0_141, %c0_142, %c0_143] : memref<1x8x64xf32, #tpu.memory_space<vmem>>, vector<1x8x8xf32>
    %168 = vector.shape_cast %167 : vector<1x8x8xf32> to vector<8x8xf32>
    %169 = vector.shape_cast %166 : vector<8x8xf32> to vector<1x8x8xf32>
    tpu.vector_store %arg21[%c0_141, %c0_142, %c0_143], %169 {strides = array<i32>} : memref<1x8x64xf32, #tpu.memory_space<vmem>>, vector<1x8x8xf32>,
    %170 = vector.extract_strided_slice %163 {offsets = [0, 48], sizes = [8, 48], strides = [1, 1]} : vector<8x384xf32> to vector<8x48xf32>
    %cst_144 = arith.constant dense<0.000000e+00> : vector<8x8xf32>
    %171 = tpu.matmul %170, %164, %cst_144 {dimension_numbers = #tpu.dot_dimension_numbers<[1], [0], [0], [1], [0, 0, 1, 1], [], []>} : vector<8x48xf32>, vector<48x8xf32>, vector<8x8xf32> -> vector<8x8xf32>
    %c0_145 = arith.constant 0 : index
    %c0_146 = arith.constant 0 : index
    %c8 = arith.constant 8 : index
    %172 = vector.load %arg21[%c0_145, %c0_146, %c8] : memref<1x8x64xf32, #tpu.memory_space<vmem>>, vector<1x8x8xf32>
    %173 = vector.shape_cast %172 : vector<1x8x8xf32> to vector<8x8xf32>
    %174 = vector.shape_cast %171 : vector<8x8xf32> to vector<1x8x8xf32>
    tpu.vector_store %arg21[%c0_145, %c0_146, %c8], %174 {strides = array<i32>} : memref<1x8x64xf32, #tpu.memory_space<vmem>>, vector<1x8x8xf32>,
    %175 = vector.extract_strided_slice %163 {offsets = [0, 96], sizes = [8, 48], strides = [1, 1]} : vector<8x384xf32> to vector<8x48xf32>
    %cst_147 = arith.constant dense<0.000000e+00> : vector<8x8xf32>
    %176 = tpu.matmul %175, %164, %cst_147 {dimension_numbers = #tpu.dot_dimension_numbers<[1], [0], [0], [1], [0, 0, 1, 1], [], []>} : vector<8x48xf32>, vector<48x8xf32>, vector<8x8xf32> -> vector<8x8xf32>
    %c0_148 = arith.constant 0 : index
    %c0_149 = arith.constant 0 : index
    %c16_150 = arith.constant 16 : index
    %177 = vector.load %arg21[%c0_148, %c0_149, %c16_150] : memref<1x8x64xf32, #tpu.memory_space<vmem>>, vector<1x8x8xf32>
    %178 = vector.shape_cast %177 : vector<1x8x8xf32> to vector<8x8xf32>
    %179 = vector.shape_cast %176 : vector<8x8xf32> to vector<1x8x8xf32>
    tpu.vector_store %arg21[%c0_148, %c0_149, %c16_150], %179 {strides = array<i32>} : memref<1x8x64xf32, #tpu.memory_space<vmem>>, vector<1x8x8xf32>,
    %180 = vector.extract_strided_slice %163 {offsets = [0, 144], sizes = [8, 48], strides = [1, 1]} : vector<8x384xf32> to vector<8x48xf32>
    %cst_151 = arith.constant dense<0.000000e+00> : vector<8x8xf32>
    %181 = tpu.matmul %180, %164, %cst_151 {dimension_numbers = #tpu.dot_dimension_numbers<[1], [0], [0], [1], [0, 0, 1, 1], [], []>} : vector<8x48xf32>, vector<48x8xf32>, vector<8x8xf32> -> vector<8x8xf32>
    %c0_152 = arith.constant 0 : index
    %c0_153 = arith.constant 0 : index
    %c24_154 = arith.constant 24 : index
    %182 = vector.load %arg21[%c0_152, %c0_153, %c24_154] : memref<1x8x64xf32, #tpu.memory_space<vmem>>, vector<1x8x8xf32>
    %183 = vector.shape_cast %182 : vector<1x8x8xf32> to vector<8x8xf32>
    %184 = vector.shape_cast %181 : vector<8x8xf32> to vector<1x8x8xf32>
    tpu.vector_store %arg21[%c0_152, %c0_153, %c24_154], %184 {strides = array<i32>} : memref<1x8x64xf32, #tpu.memory_space<vmem>>, vector<1x8x8xf32>,
    %185 = vector.extract_strided_slice %163 {offsets = [0, 192], sizes = [8, 48], strides = [1, 1]} : vector<8x384xf32> to vector<8x48xf32>
    %cst_155 = arith.constant dense<0.000000e+00> : vector<8x8xf32>
    %186 = tpu.matmul %185, %164, %cst_155 {dimension_numbers = #tpu.dot_dimension_numbers<[1], [0], [0], [1], [0, 0, 1, 1], [], []>} : vector<8x48xf32>, vector<48x8xf32>, vector<8x8xf32> -> vector<8x8xf32>
    %c0_156 = arith.constant 0 : index
    %c0_157 = arith.constant 0 : index
    %c32_158 = arith.constant 32 : index
    %187 = vector.load %arg21[%c0_156, %c0_157, %c32_158] : memref<1x8x64xf32, #tpu.memory_space<vmem>>, vector<1x8x8xf32>
    %188 = vector.shape_cast %187 : vector<1x8x8xf32> to vector<8x8xf32>
    %189 = vector.shape_cast %186 : vector<8x8xf32> to vector<1x8x8xf32>
    tpu.vector_store %arg21[%c0_156, %c0_157, %c32_158], %189 {strides = array<i32>} : memref<1x8x64xf32, #tpu.memory_space<vmem>>, vector<1x8x8xf32>,
    %190 = vector.extract_strided_slice %163 {offsets = [0, 240], sizes = [8, 48], strides = [1, 1]} : vector<8x384xf32> to vector<8x48xf32>
    %cst_159 = arith.constant dense<0.000000e+00> : vector<8x8xf32>
    %191 = tpu.matmul %190, %164, %cst_159 {dimension_numbers = #tpu.dot_dimension_numbers<[1], [0], [0], [1], [0, 0, 1, 1], [], []>} : vector<8x48xf32>, vector<48x8xf32>, vector<8x8xf32> -> vector<8x8xf32>
    %c0_160 = arith.constant 0 : index
    %c0_161 = arith.constant 0 : index
    %c40 = arith.constant 40 : index
    %192 = vector.load %arg21[%c0_160, %c0_161, %c40] : memref<1x8x64xf32, #tpu.memory_space<vmem>>, vector<1x8x8xf32>
    %193 = vector.shape_cast %192 : vector<1x8x8xf32> to vector<8x8xf32>
    %194 = vector.shape_cast %191 : vector<8x8xf32> to vector<1x8x8xf32>
    tpu.vector_store %arg21[%c0_160, %c0_161, %c40], %194 {strides = array<i32>} : memref<1x8x64xf32, #tpu.memory_space<vmem>>, vector<1x8x8xf32>,
    %195 = vector.extract_strided_slice %163 {offsets = [0, 288], sizes = [8, 48], strides = [1, 1]} : vector<8x384xf32> to vector<8x48xf32>
    %cst_162 = arith.constant dense<0.000000e+00> : vector<8x8xf32>
    %196 = tpu.matmul %195, %164, %cst_162 {dimension_numbers = #tpu.dot_dimension_numbers<[1], [0], [0], [1], [0, 0, 1, 1], [], []>} : vector<8x48xf32>, vector<48x8xf32>, vector<8x8xf32> -> vector<8x8xf32>
    %c0_163 = arith.constant 0 : index
    %c0_164 = arith.constant 0 : index
    %c48_165 = arith.constant 48 : index
    %197 = vector.load %arg21[%c0_163, %c0_164, %c48_165] : memref<1x8x64xf32, #tpu.memory_space<vmem>>, vector<1x8x8xf32>
    %198 = vector.shape_cast %197 : vector<1x8x8xf32> to vector<8x8xf32>
    %199 = vector.shape_cast %196 : vector<8x8xf32> to vector<1x8x8xf32>
    tpu.vector_store %arg21[%c0_163, %c0_164, %c48_165], %199 {strides = array<i32>} : memref<1x8x64xf32, #tpu.memory_space<vmem>>, vector<1x8x8xf32>,
    %200 = vector.extract_strided_slice %163 {offsets = [0, 336], sizes = [8, 48], strides = [1, 1]} : vector<8x384xf32> to vector<8x48xf32>
    %cst_166 = arith.constant dense<0.000000e+00> : vector<8x8xf32>
    %201 = tpu.matmul %200, %164, %cst_166 {dimension_numbers = #tpu.dot_dimension_numbers<[1], [0], [0], [1], [0, 0, 1, 1], [], []>} : vector<8x48xf32>, vector<48x8xf32>, vector<8x8xf32> -> vector<8x8xf32>
    %c0_167 = arith.constant 0 : index
    %c0_168 = arith.constant 0 : index
    %c56 = arith.constant 56 : index
    %202 = vector.load %arg21[%c0_167, %c0_168, %c56] : memref<1x8x64xf32, #tpu.memory_space<vmem>>, vector<1x8x8xf32>
    %203 = vector.shape_cast %202 : vector<1x8x8xf32> to vector<8x8xf32>
    %204 = vector.shape_cast %201 : vector<8x8xf32> to vector<1x8x8xf32>
    tpu.vector_store %arg21[%c0_167, %c0_168, %c56], %204 {strides = array<i32>} : memref<1x8x64xf32, #tpu.memory_space<vmem>>, vector<1x8x8xf32>,
    return
  }
  func.func @transform_0(%arg0: i32) -> (i32, i32, i32) {
    %c0_i32 = arith.constant 0 : i32
    %c0_i32_0 = arith.constant 0 : i32
    %c0_i32_1 = arith.constant 0 : i32
    return %arg0, %c0_i32, %c0_i32_0 : i32, i32, i32
  }
  func.func @transform_1(%arg0: i32) -> (i32, i32) {
    %c0_i32 = arith.constant 0 : i32
    %c0_i32_0 = arith.constant 0 : i32
    %c0_i32_1 = arith.constant 0 : i32
    return %c0_i32, %c0_i32_0 : i32, i32
  }
  func.func @transform_2(%arg0: i32) -> (i32, i32) {
    %c0_i32 = arith.constant 0 : i32
    %c0_i32_0 = arith.constant 0 : i32
    %c0_i32_1 = arith.constant 0 : i32
    return %c0_i32, %c0_i32_0 : i32, i32
  }
  func.func @transform_3(%arg0: i32) -> (i32, i32) {
    %c0_i32 = arith.constant 0 : i32
    %c0_i32_0 = arith.constant 0 : i32
    %c0_i32_1 = arith.constant 0 : i32
    return %c0_i32, %c0_i32_0 : i32, i32
  }
  func.func @transform_4(%arg0: i32) -> (i32, i32) {
    %c0_i32 = arith.constant 0 : i32
    %c0_i32_0 = arith.constant 0 : i32
    %c0_i32_1 = arith.constant 0 : i32
    return %c0_i32, %c0_i32_0 : i32, i32
  }
  func.func @transform_5(%arg0: i32) -> (i32, i32) {
    %c0_i32 = arith.constant 0 : i32
    %c0_i32_0 = arith.constant 0 : i32
    %c0_i32_1 = arith.constant 0 : i32
    return %c0_i32, %c0_i32_0 : i32, i32
  }
  func.func @transform_6(%arg0: i32) -> (i32, i32) {
    %c0_i32 = arith.constant 0 : i32
    %c0_i32_0 = arith.constant 0 : i32
    %c0_i32_1 = arith.constant 0 : i32
    return %c0_i32, %c0_i32_0 : i32, i32
  }
  func.func @transform_7(%arg0: i32) -> (i32, i32) {
    %c0_i32 = arith.constant 0 : i32
    %c0_i32_0 = arith.constant 0 : i32
    %c0_i32_1 = arith.constant 0 : i32
    return %c0_i32, %c0_i32_0 : i32, i32
  }
  func.func @transform_8(%arg0: i32) -> (i32, i32) {
    %c0_i32 = arith.constant 0 : i32
    %c0_i32_0 = arith.constant 0 : i32
    %c0_i32_1 = arith.constant 0 : i32
    return %c0_i32, %c0_i32_0 : i32, i32
  }
  func.func @transform_9(%arg0: i32) -> (i32, i32) {
    %c0_i32 = arith.constant 0 : i32
    %c0_i32_0 = arith.constant 0 : i32
    %c0_i32_1 = arith.constant 0 : i32
    return %c0_i32, %c0_i32_0 : i32, i32
  }
  func.func @transform_10(%arg0: i32) -> (i32, i32) {
    %c0_i32 = arith.constant 0 : i32
    %c0_i32_0 = arith.constant 0 : i32
    %c0_i32_1 = arith.constant 0 : i32
    return %c0_i32, %c0_i32_0 : i32, i32
  }
  func.func @transform_11(%arg0: i32) -> (i32, i32) {
    %c0_i32 = arith.constant 0 : i32
    %c0_i32_0 = arith.constant 0 : i32
    %c0_i32_1 = arith.constant 0 : i32
    return %c0_i32, %c0_i32_0 : i32, i32
  }
  func.func @transform_12(%arg0: i32) -> (i32, i32) {
    %c0_i32 = arith.constant 0 : i32
    %c0_i32_0 = arith.constant 0 : i32
    %c0_i32_1 = arith.constant 0 : i32
    return %c0_i32, %c0_i32_0 : i32, i32
  }
  func.func @transform_13(%arg0: i32) -> (i32, i32) {
    %c0_i32 = arith.constant 0 : i32
    %c0_i32_0 = arith.constant 0 : i32
    %c0_i32_1 = arith.constant 0 : i32
    return %c0_i32, %c0_i32_0 : i32, i32
  }
  func.func @transform_14(%arg0: i32) -> (i32, i32) {
    %c0_i32 = arith.constant 0 : i32
    %c0_i32_0 = arith.constant 0 : i32
    %c0_i32_1 = arith.constant 0 : i32
    return %c0_i32, %c0_i32_0 : i32, i32
  }
  func.func @transform_15(%arg0: i32) -> (i32, i32) {
    %c0_i32 = arith.constant 0 : i32
    %c0_i32_0 = arith.constant 0 : i32
    %c0_i32_1 = arith.constant 0 : i32
    return %c0_i32, %c0_i32_0 : i32, i32
  }
  func.func @transform_16(%arg0: i32) -> (i32, i32) {
    %c0_i32 = arith.constant 0 : i32
    %c0_i32_0 = arith.constant 0 : i32
    %c0_i32_1 = arith.constant 0 : i32
    return %c0_i32, %c0_i32_0 : i32, i32
  }
  func.func @transform_17(%arg0: i32) -> (i32, i32) {
    %c0_i32 = arith.constant 0 : i32
    %c0_i32_0 = arith.constant 0 : i32
    %c0_i32_1 = arith.constant 0 : i32
    return %c0_i32, %c0_i32_0 : i32, i32
  }
  func.func @transform_18(%arg0: i32) -> (i32, i32) {
    %c0_i32 = arith.constant 0 : i32
    %c0_i32_0 = arith.constant 0 : i32
    %c0_i32_1 = arith.constant 0 : i32
    return %c0_i32, %c0_i32_0 : i32, i32
  }
  func.func @transform_19(%arg0: i32) -> (i32, i32) {
    %c0_i32 = arith.constant 0 : i32
    %c0_i32_0 = arith.constant 0 : i32
    %c0_i32_1 = arith.constant 0 : i32
    return %c0_i32, %c0_i32_0 : i32, i32
  }
  func.func @transform_20(%arg0: i32) -> (i32, i32, i32) {
    %c0_i32 = arith.constant 0 : i32
    %c0_i32_0 = arith.constant 0 : i32
    %c0_i32_1 = arith.constant 0 : i32
    return %arg0, %c0_i32, %c0_i32_0 : i32, i32, i32
  }
}

</mosaic_0001>

<bundles_post_ra>
// kernel: tpu_custom_call.1
= control target key start
LH: loop header
LB: loop body
LE: loop exit
PB: predicated region body
PF: predicated region fallthrough
CT: control target
= control target key end

     0   :  { %s3693_s0 = inlined_call_operand.vmem [shape: f32[2,4,256], index: 0, kind: input, shape index: {}]   ;;  %s3694_s1 = inlined_call_operand.vmem [shape: f32[1,384], index: 1, kind: input, shape index: {}]   ;;  %s3695_s2 = inlined_call_operand.vmem [shape: f32[48,8], index: 2, kind: input, shape index: {}]   ;;  %s3696_s3 = inlined_call_operand.vmem [shape: bf16[8,4], index: 3, kind: input, shape index: {}]   ;;  %s3697_s4 = inlined_call_operand.vmem [shape: f32[8,1], index: 4, kind: input, shape index: {}]   ;;  %s3698_s5 = inlined_call_operand.vmem [shape: f32[8,1], index: 5, kind: input, shape index: {}]   ;;  %s3699_s6 = inlined_call_operand.vmem [shape: bf16[8,72], index: 6, kind: input, shape index: {}]   ;;  %s3700_s7 = inlined_call_operand.vmem [shape: f32[8,1], index: 7, kind: input, shape index: {}]   ;;  %s3701_s8 = inlined_call_operand.vmem [shape: f32[8,1], index: 8, kind: input, shape index: {}]   ;;  %s3702_s9 = inlined_call_operand.vmem [shape: bf16[8,72], index: 9, kind: input, shape index: {}]   ;;  %s3703_s10 = inlined_call_operand.vmem [shape: f32[8,1], index: 10, kind: input, shape index: {}]   ;;  %s3704_s11 = inlined_call_operand.vmem [shape: f32[8,1], index: 11, kind: input, shape index: {}]   ;;  %s3705_s12 = inlined_call_operand.vmem [shape: bf16[8,72], index: 12, kind: input, shape index: {}]   ;;  %s3706_s13 = inlined_call_operand.vmem [shape: f32[8,1], index: 13, kind: input, shape index: {}]   ;;  %s3707_s14 = inlined_call_operand.vmem [shape: f32[8,1], index: 14, kind: input, shape index: {}]   ;;  %s3708_s15 = inlined_call_operand.vmem [shape: bf16[8,8], index: 15, kind: input, shape index: {}]   ;;  %s3709_s16 = inlined_call_operand.vmem [shape: bf16[8,8], index: 16, kind: input, shape index: {}]   ;;  %s3710_s17 = inlined_call_operand.vmem [shape: bf16[8,8], index: 17, kind: input, shape index: {}]   ;;  %s3711_s18 = inlined_call_operand.vmem [shape: f32[8,1], index: 18, kind: input, shape index: {}]   ;;  %s3712_s19 = inlined_call_operand.vmem [shape: f32[8,1], index: 19, kind: input, shape index: {}]   ;;  %s3713_s20 = inlined_call_operand.hbm [shape: f32[2,8,64], index: 20, kind: output, shape index: {}]  }
   0x1   :  { %3742 = sst [smem:[#allocation8_spill]] %s3693_s0 }
   0x2   :  { %3743 = sst [smem:[#allocation9_spill]] %s3694_s1 }
   0x3   :  { %3744 = sst [smem:[#allocation10_spill]] %s3695_s2 }
   0x4   :  { %3745 = sst [smem:[#allocation11_spill]] %s3696_s3 }
   0x5   :  { %3746 = sst [smem:[#allocation12_spill]] %s3697_s4 }
   0x6   :  { %3747 = sst [smem:[#allocation13_spill]] %s3698_s5 }
   0x7   :  { %3748 = sst [smem:[#allocation14_spill]] %s3699_s6 }
   0x8   :  { %3749 = sst [smem:[#allocation15_spill]] %s3700_s7 }
   0x9   :  { %3750 = sst [smem:[#allocation16_spill]] %s3701_s8 }
   0xa   :  { %3751 = sst [smem:[#allocation17_spill]] %s3702_s9 }
   0xb   :  { %25 = vsyncpa [#allocation5], 0 }
   0xc   :  { %27 = vsyncpa [#allocation5 + $0x1], 0  ;;  %s2820_s1 = smov 0   ;;  %s2822_s22 = smov 0  }
   0xd   :  { %s2824_s23 = smov 0   ;;  %s2826_s24 = smov 0  }
   0xe LB: > { %s2841_s2 = sadd.s32 4294967295, %s2668_s24   ;;  %s2478_s25 = sadd.s32 4294967294, %s2668_s24   ;;  %s2668_s24 = sphi %s2826_s24, %s3787_s24   ;;  %s2664_s23 = sphi %s2824_s23, %s3786_s23   ;;  %s2660_s22 = sphi %s2822_s22, %s3785_s22   ;;  %s2656_s1 = sphi %s2820_s1, %s3784_s1  }
   0xf   : > { %s2845_s3 = sadd.s32 1, %s2668_s24   ;;  %s465_s26 = sadd.s32 1, %s2664_s23 }
  0x10   : > { %s462_s27 = ssub.s32 %s2668_s24, %s2845_s3  ;;  %p475_p0 = scmp.ne.s32.totalorder %s2664_s23, %s2660_s22 }
  0x11   : > { %p463_p1 = scmp.eq.s32.totalorder %s462_s27, 0  ;;  %p476_p2 = scmp.eq.s32.totalorder %s2841_s2, 1 }
  0x12   : > { %p481_p3 = scmp.ne.s32.totalorder %s2660_s22, %s2656_s1  ;;  %p482_p4 = scmp.eq.s32.totalorder %s2478_s25, 1 }
  0x13   : > { %s2856_s28 = scalar_select %p463_p1, %s2664_s23, %s465_s26  }
  0x14   : > { %p2858_p5 = por %p476_p2, %p475_p0  ;;  %p2862_p6 = por %p482_p4, %p481_p3 }
  0x15   : > { %3752 = sst [smem:[#allocation7_spill]] %s2856_s28  ;;  %p2481_p7 = scmp.ge.s32.totalorder %s2668_s24, 1 }
  0x16   : > { %p565_p8 = scmp.lt.s32.totalorder %s2668_s24, 3 }
  0x18   : > { %p566_p9 = pnand %p2481_p7, %p565_p8 }
  0x19   : > { %p623_p10 = scmp.lt.s32.totalorder (!%p566_p9), %s2841_s2, 1  ;;  %s3755_s26 = sld [smem:[#allocation8_spill]] (!%p566_p9) }
  0x1a   : > { %569 = sbr.rel (%p566_p9) target bundleno = 2591 (0xa1f), region = 100  ;;  %s3715_s21 = smov (!%p566_p9), 28  }
  0x1b   : > { %s2673_s25 = smov (!%p566_p9), 12   ;;  %s3757_s5 = sld [smem:[#allocation13_spill]] (!%p566_p9) }
  0x1c   : > { %s3767_s28 = smov (!%p566_p9), 103   ;;  %s3768_s8 = sld [smem:[#allocation16_spill]] (!%p566_p9) }
  0x1d   : > { %s3769_s7 = sld [smem:[#allocation15_spill]] (!%p566_p9) }
  0x1e   : > { %s3770_s6 = sld [smem:[#allocation14_spill]] (!%p566_p9) }
  0x1f   : > { %s624_s30 = scalar_select %p623_p10, %s2841_s2, 1  ;;  %vm635_vm0 = vcmask 1041408   ;;  %v2675_v30 = vmov 0   ;;  %vm643_vm1 = vcmask 156704   ;;  %vm656_vm2 = vcmask 353504  }
  0x20   : > { %630 = vst [vmem:[#allocation2] sm:$0x3f] %v2675_v30  ;;  %2603 = vset.pattern.permute.xlu1 %v2675_v30  ;;  %2604 = vset.pattern.permute.xlu2 %v2675_v30  ;;  %vm669_vm3 = vcmask 550304   ;;  %vm711_vm4 = vcmask 1042400   ;;  %vm712_vm5 = vcmask 93186   ;;  %vm708_vm6 = vcmask 359424  }
  0x21   : > { %s2518_s0 = sshll.u32 %s624_s30, 3  ;;  %s2670_s30 = smov 4   ;;  %2605 = vset.pattern.permute.xlu0 %v2675_v30  ;;  %vm682_vm7 = vcmask 747104   ;;  %vm695_vm8 = vcmask 943904   ;;  %vm713_vm9 = vmor %vm712_vm5, %vm711_vm4  ;;  %vm726_vm10 = vcmask 287904   ;;  %vm739_vm11 = vcmask 484704  }
  0x22   : > { %s2873_s27 = scalar_lea.vmem %s3755_s26, %s2518_s0  ;;  %s2671_s0 = smov 20   ;;  %vm781_vm12 = vcmask 1042336   ;;  %vm782_vm13 = vcmask 27650   ;;  %vm752_vm14 = vcmask 681504   ;;  %vm778_vm15 = vcmask 687104  }
  0x23   : > { %v631_v0 = vld [vmem:[%s2873_s27] sm:$0xf]  ;;  %s2674_s26 = smov 44   ;;  %v767_v27 = vld [vmem:[%s2873_s27 + $0x4] sm:$0xf]  ;;  %vm809_vm4 = vcmask 419104  }
  0x24   : > { %v658_v1 = vld [vmem:[%s2873_s27] sm:$0xf]  ;;  %v632_v3 = vpack.c.bf16 %v631_v0, %v631_v0  ;;  %v741_v31 = vld [vmem:[%s2873_s27 + $0x4] sm:$0xf]  ;;  %v768_v34 = vpack.c.bf16 %v767_v27, %v767_v27  ;;  %vm822_vm5 = vcmask 615904   ;;  %s3776_s9 = sld [smem:[#allocation17_spill]] }
  0x25   : > { %v645_v2 = vld [vmem:[%s2873_s27] sm:$0xf]  ;;  %v659_v4 = vpack.c.bf16 %v658_v1, %v658_v1  ;;  %v754_v32 = vld [vmem:[%s2873_s27 + $0x4] sm:$0xf]  ;;  %v742_v37 = vpack.c.bf16 %v741_v31, %v741_v31 }
  0x26   : > { %v697_v5 = vld [vmem:[%s2873_s27] sm:$0xf]  ;;  %v634_v6 = vrot.slane %v632_v3, 2  ;;  %v646_v8 = vpack.c.bf16 %v645_v2, %v645_v2  ;;  %v755_v38 = vpack.c.bf16 %v754_v32, %v754_v32  ;;  %v770_v39 = vrot.slane %v768_v34, 2  ;;  %v785_v40 = vld [vmem:[%s2873_s27 + $0x4] sm:$0xf] }
  0x27   : > { %v661_v7 = vrot.slane %v659_v4, 2  ;;  %v698_v9 = vpack.c.bf16 %v697_v5, %v697_v5  ;;  %v671_v10 = vld [vmem:[%s2873_s27] sm:$0xf]  ;;  %v744_v41 = vrot.slane %v742_v37, 2  ;;  %v798_v43 = vld [vmem:[%s2873_s27 + $0x4] sm:$0xf]  ;;  %v786_v46 = vpack.c.bf16 %v785_v40, %v785_v40 }
  0x28   : > { %v638_v11 = vsel %vm635_vm0, %v632_v3, %v634_v6  ;;  %v684_v13 = vld [vmem:[%s2873_s27] sm:$0xf]  ;;  %v648_v14 = vrot.slane %v646_v8, 2  ;;  %v672_v17 = vpack.c.bf16 %v671_v10, %v671_v10  ;;  %v757_v42 = vrot.slane %v755_v38, 2  ;;  %v811_v44 = vld [vmem:[%s2873_s27 + $0x4] sm:$0xf] }
  0x29   : > { %v664_v12 = vsel %vm635_vm0, %v659_v4, %v661_v7  ;;  %640 = vrot.lane.b32.xlu0 %v638_v11, %s2670_s30  ;;  %v700_v15 = vrot.slane %v698_v9, 2  ;;  %v715_v16 = vld [vmem:[%s2873_s27] sm:$0xf]  ;;  %v685_v20 = vpack.c.bf16 %v684_v13, %v684_v13  ;;  %s2676_s30 = smov 36   ;;  %v773_v45 = vsel %vm635_vm0, %v768_v34, %v770_v39  ;;  %v824_v52 = vld [vmem:[%s2873_s27 + $0x4] sm:$0xf] }
  0x2a   : > { %666 = vrot.lane.b32.xlu1 %v664_v12, %s2671_s0  ;;  %v728_v18 = vld [vmem:[%s2873_s27] sm:$0xf]  ;;  %v674_v19 = vrot.slane %v672_v17, 2  ;;  %v716_v21 = vpack.c.bf16 %v715_v16, %v715_v16  ;;  %v651_v22 = vsel %vm635_vm0, %v646_v8, %v648_v14  ;;  %s2677_s0 = smov 52   ;;  %v747_v47 = vsel %vm635_vm0, %v742_v37, %v744_v41  ;;  %v837_v55 = vld [vmem:[%s2873_s27 + $0x4] sm:$0xf] }
  0x2b   : > { %v703_v23 = vsel %vm635_vm0, %v698_v9, %v700_v15  ;;  %v729_v24 = vpack.c.bf16 %v728_v18, %v728_v18  ;;  %v687_v26 = vrot.slane %v685_v20, 2  ;;  %v760_v48 = vsel %vm635_vm0, %v755_v38, %v757_v42  ;;  %s2685_s27 = smov 116   ;;  %v915_v18 = vld [vmem:[%s3757_s5] sm:$0xff]  ;;  %s3764_s5 = smov 102  }
  0x2c   : > { %v677_v25 = vsel %vm635_vm0, %v672_v17, %v674_v19  ;;  %v718_v28 = vrot.slane %v716_v21, 2  ;;  %v799_v49 = vpack.c.bf16 %v798_v43, %v798_v43  ;;  %v812_v50 = vpack.c.bf16 %v811_v44, %v811_v44 }
  0x2d   : > { %679 = vrot.lane.b32.xlu2 %v677_v25, %s3715_s21  ;;  %v731_v29 = vrot.slane %v729_v24, 2  ;;  %v690_v33 = vsel %vm635_vm0, %v685_v20, %v687_v26  ;;  %v788_v51 = vrot.slane %v786_v46, 2  ;;  %v825_v57 = vpack.c.bf16 %v824_v52, %v824_v52  ;;  %s3717_s21 = smov 124  }
  0x2e   : > { %v721_v35 = vsel %vm635_vm0, %v716_v21, %v718_v28  ;;  %v801_v53 = vrot.slane %v799_v49, 2  ;;  %v814_v54 = vrot.slane %v812_v50, 2  ;;  %v838_v60 = vpack.c.bf16 %v837_v55, %v837_v55 }
  0x2f   : > { %v734_v36 = vsel %vm635_vm0, %v729_v24, %v731_v29  ;;  %v791_v56 = vsel %vm635_vm0, %v786_v46, %v788_v51  ;;  %v827_v61 = vrot.slane %v825_v57, 2 }
  0x30   : > { %v804_v58 = vsel %vm635_vm0, %v799_v49, %v801_v53  ;;  %v817_v59 = vsel %vm635_vm0, %v812_v50, %v814_v54  ;;  %v840_v62 = vrot.slane %v838_v60, 2 }
  0x31   : > { %653 = vrot.lane.b32.xlu0 %v651_v22, %s2673_s25  ;;  %s2678_s25 = smov 60   ;;  %v830_v63 = vsel %vm635_vm0, %v825_v57, %v827_v61 }
  0x32   : > { %705 = vrot.lane.b32.xlu1 %v703_v23, %s2674_s26  ;;  %s2679_s26 = smov 84   ;;  %v843_v0 = vsel %vm635_vm0, %v838_v60, %v840_v62 }
  0x35   : > { %692 = vrot.lane.b32.xlu2 %v690_v33, %s2676_s30  ;;  %s2680_s30 = smov 68  }
  0x39   : > { %723 = vrot.lane.b32.xlu0 %v721_v35, %s2677_s0  ;;  %s3719_s0 = smov 76  }
  0x3a   : > { %736 = vrot.lane.b32.xlu1 %v734_v36, %s2678_s25  ;;  %s2682_s25 = smov 92  }
  0x3d   : > { %775 = vrot.lane.b32.xlu2 %v773_v45, %s2679_s26  ;;  %s2683_s26 = smov 100  }
  0x41   : > { %749 = vrot.lane.b32.xlu0 %v747_v47, %s2680_s30  ;;  %s2684_s30 = smov 108  }
  0x42   : > { %762 = vrot.lane.b32.xlu1 %v760_v48, %s3719_s0  ;;  %s3759_s0 = sld [smem:[#allocation9_spill]] }
  0x45   : > { %793 = vrot.lane.b32.xlu2 %v791_v56, %s2682_s25  ;;  %s3727_s25 = smov 78  }
  0x48   : > { %v629_v33 = vld [vmem:[%s3759_s0] sm:$0x7]  ;;  %s3721_s0 = smov 96  }
  0x49   : > { %806 = vrot.lane.b32.xlu0 %v804_v58, %s2683_s26  ;;  %s3758_s26 = sld [smem:[#allocation11_spill]]  ;;  %v2930_v39 = vperm.slane %v629_v33, 0  ;;  %v2932_v40 = vperm.slane %v629_v33, 1  ;;  %v2942_v48 = vperm.slane %v629_v33, 2 }
  0x4a   : > { %819 = vrot.lane.b32.xlu1 %v817_v59, %s2684_s30  ;;  %s3756_s30 = sld [smem:[#allocation12_spill]] }
  0x4d   : > { %832 = vrot.lane.b32.xlu2 %v830_v63, %s2685_s27  ;;  %s2692_s27 = smov 79  }
  0x4f   : > { %v850_v31 = vld [vmem:[%s3758_s26] sm:$0xf]  ;;  %s3723_s26 = smov 102  }
  0x50   : > { %v906_v17 = vld [vmem:[%s3756_s30] sm:$0xff]  ;;  %s3731_s30 = smov 80  }
  0x51   : > { %845 = vrot.lane.b32.xlu0 %v843_v0, %s3717_s21  ;;  %s3729_s21 = smov 103  }
  0x52   : > { %909 = vperm.xlu1 %2603, %v906_v17  }
  0x55   : > { %918 = vperm.xlu2 %2604, %v915_v18  }
  0x87   : > { %v680_v1 = vpop.permute.xlu2 %679 }
  0x8f   : > { %v693_v4 = vpop.permute.xlu2 %692 }
  0x97   : > { %v776_v9 = vpop.permute.xlu2 %775 }
  0x98   : > { %v777_v13 = vrot.slane %v776_v9, 6 }
  0x9a   : > { %v779_v16 = vsel %vm778_vm15, %v777_v13, %v776_v9  ;;  %vm952_vm15 = vcmask 1043456  }
  0x9b   : > { %v641_v2 = vpop.permute.xlu0 %640 }
  0x9c   : > { %v667_v3 = vpop.permute.xlu1 %666  ;;  %644 = vst.msk [vmem:[#allocation2] sm:$0x3] %vm643_vm1, %v641_v2  ;;  %vm765_vm1 = vcmask 878304  }
  0x9f   : > { %v794_v12 = vpop.permute.xlu2 %793 }
  0xa3   : > { %v654_v5 = vpop.permute.xlu0 %653 }
  0xa4   : > { %v706_v6 = vpop.permute.xlu1 %705  ;;  %657 = vst.msk [vmem:[#allocation2] sm:$0x3] %vm656_vm2, %v654_v5  ;;  %vm783_vm2 = vmor %vm782_vm13, %vm781_vm12  ;;  %vm957_vm12 = vcmask 1047556   ;;  %vm950_vm13 = vcmask 785408  }
  0xa5   : > { %v707_v7 = vrot.slane %v706_v6, 6  ;;  %670 = vst.msk [vmem:[#allocation2] sm:$0x3] %vm669_vm3, %v667_v3  ;;  %vm796_vm3 = vcmask 222304  }
  0xa6   : > { %683 = vst.msk [vmem:[#allocation2] sm:$0x3] %vm682_vm7, %v680_v1  ;;  %vm848_vm7 = vcmask 1009504  }
  0xa7   : > { %v709_v8 = vsel %vm708_vm6, %v707_v7, %v706_v6  ;;  %696 = vst.msk [vmem:[#allocation2] sm:$0x3] %vm695_vm8, %v693_v4  ;;  %v833_v19 = vpop.permute.xlu2 %832  ;;  %vm835_vm6 = vcmask 812704   ;;  %vm857_vm8 = vcmask 31744  }
  0xa8   : > { %714 = vst.msk [vmem:[#allocation2] sm:$0xf] %vm713_vm9, %v709_v8  ;;  %vm934_vm9 = vcmask 781312  }
  0xa9   : > { %935 = vst.msk [vmem:[#allocation3] sm:$0xf] %vm934_vm9, %v2675_v30  ;;  %vm996_vm9 = vcmask 1031168  }
  0xab   : > { %v724_v10 = vpop.permute.xlu0 %723 }
  0xac   : > { %v737_v11 = vpop.permute.xlu1 %736  ;;  %727 = vst.msk [vmem:[#allocation2 + $0x2] sm:$0x3] %vm726_vm10, %v724_v10  ;;  %vm937_vm10 = vcmask 523268  }
  0xad   : > { %740 = vst.msk [vmem:[#allocation2 + $0x2] sm:$0x3] %vm739_vm11, %v737_v11 }
  0xaf   : > { %v919_v34 = vpop.permute.xlu2 %918 }
  0xb3   : > { %v750_v14 = vpop.permute.xlu0 %749 }
  0xb4   : > { %v763_v15 = vpop.permute.xlu1 %762  ;;  %753 = vst.msk [vmem:[#allocation2 + $0x2] sm:$0x3] %vm752_vm14, %v750_v14 }
  0xb5   : > { %766 = vst.msk [vmem:[#allocation2 + $0x2] sm:$0x3] %vm765_vm1, %v763_v15  ;;  %vm961_vm1 = vcmask 785412  }
  0xb6   : > { %784 = vst.msk [vmem:[#allocation2 + $0x2] sm:$0xf] %vm783_vm2, %v779_v16  ;;  %vm2960_vm2 = vmor %vm961_vm1, %vm952_vm15  ;;  %vm1362_vm1 = vcmask 621568  }
  0xb7   : > { %797 = vst.msk [vmem:[#allocation2 + $0x4] sm:$0x3] %vm796_vm3, %v794_v12  ;;  %vm1068_vm3 = vcmask 637952  }
  0xbb   : > { %v807_v20 = vpop.permute.xlu0 %806 }
  0xbc   : > { %v820_v21 = vpop.permute.xlu1 %819  ;;  %810 = vst.msk [vmem:[#allocation2 + $0x4] sm:$0x3] %vm809_vm4, %v807_v20  ;;  %vm1044_vm4 = vcmask 654336  }
  0xbd   : > { %823 = vst.msk [vmem:[#allocation2 + $0x4] sm:$0x3] %vm822_vm5, %v820_v21  ;;  %vm1056_vm5 = vcmask 646144  }
  0xbe   : > { %836 = vst.msk [vmem:[#allocation2 + $0x4] sm:$0x3] %vm835_vm6, %v833_v19  ;;  %vm984_vm6 = vcmask 1039360  }
  0xc3   : > { %v846_v22 = vpop.permute.xlu0 %845 }
  0xc4   : > { %849 = vst.msk [vmem:[#allocation2 + $0x4] sm:$0x3] %vm848_vm7, %v846_v22  ;;  %v910_v32 = vpop.permute.xlu1 %909  ;;  %vm1020_vm7 = vcmask 842752  }
  0xcb   : > { %v851_v23 = vld [vmem:[#allocation2] sm:$0x3f] }
  0xcc   : > { %853 = vst [vmem:[#allocation1] ss:$4 sm:$0xff] %v851_v23 }
  0xd3   : > { %v854_v24 = vld.sshfl [vmem:[#allocation1] sm:$0xff pattern:$0x73625140]  ;;  %v855_v25 = vld.sshfl [vmem:[#allocation1 + $0x8] sm:$0xff pattern:$0x73625140] }
  0xd4   : > { %v861_v26 = vsel %vm635_vm0, %v854_v24, 0  ;;  %v863_v27 = vsel %vm635_vm0, %v855_v25, 0  ;;  %v856_v28 = vld.sshfl [vmem:[#allocation1 + $0x10] sm:$0xff pattern:$0x73625140] }
  0xd5   : > { %874 = vmatpush.bf16.msra.mxu0 %v861_v26  ;;  %887 = vmatpush.bf16.msra.mxu1 %v863_v27  ;;  %v865_v29 = vsel %vm635_vm0, %v856_v28, 0  ;;  %vm936_vm0 = vcmask 1044224  }
  0xd6   : > { %900 = vmatpush.bf16.msra.mxu2 %v865_v29  ;;  %vm938_vm11 = vmor %vm937_vm10, %vm936_vm0  ;;  %vm1177_vm10 = vcmask 465920  }
  0xd7   : > { %939 = vst.msk [vmem:[#allocation3 + $0xc] sm:$0xff] %vm938_vm11, %v2675_v30  ;;  %vm2952_vm14 = vmor %vm957_vm12, %vm936_vm0  ;;  %vm1008_vm0 = vcmask 850944   ;;  %vm1205_vm11 = vcmask 588800   ;;  %vm1408_vm12 = vcmask 228352  }
  0xd8   : > { %2485 = vmatmul.msk.bf16.vlgmr.msra.gmra.mxu0 %vm857_vm8, %v850_v31  ;;  %2486 = vmatmul.msk.bf16.vlgmr.msra.gmra.mxu1 %vm857_vm8, %v850_v31 }
  0xd9   : > { %2487 = vmatmul.msk.bf16.vlgmr.msra.gmra.mxu2 %vm857_vm8, %v850_v31  ;;  %vm1032_vm8 = vcmask 834560  }
 0x155   : > { %v876_v35 = vpop.f32.mrf.mxu0  ;;  %v889_v36 = vpop.f32.mrf.mxu1 }
 0x156   : > { %v912_v37 = vmul.f32 %v910_v32, %v876_v35  ;;  %v913_v38 = vmul.f32 %v910_v32, %v889_v36 }
 0x158   : > { %v921_v41 = vadd.f32 %v919_v34, %v912_v37  ;;  %v922_v42 = vadd.f32 %v919_v34, %v913_v38 }
 0x15a   : > { %v2935_v43 = vmul.f32 %v2930_v39, %v921_v41  ;;  %v2938_v44 = vmul.f32 %v2932_v40, %v922_v42 }
 0x15c   : > { %v902_v45 = vpop.f32.mrf.mxu2  ;;  %v940_v46 = vpack.c.bf16 %v2938_v44, %v2935_v43 }
 0x15d   : > { %v914_v47 = vmul.f32 %v910_v32, %v902_v45  ;;  %v878_v49 = vpop.f32.mrf.mxu0  ;;  %v891_v50 = vpop.f32.mrf.mxu1 }
 0x15e   : > { %944 = vrot.lane.b32.xlu0 %v940_v46, %s3721_s0 }
 0x15f   : > { %v923_v51 = vadd.f32 %v919_v34, %v914_v47 }
 0x161   : > { %v2946_v52 = vmul.f32 %v2942_v48, %v923_v51 }
 0x163   : > { %v941_v53 = vpack.c.bf16 %v2946_v52, %v2946_v52 }
 0x164   : > { %v904_v54 = vpop.f32.mrf.mxu2 }
 0x165   : > { %946 = vrot.lane.b32.xlu1 %v941_v53, %s3721_s0  ;;  %s3725_s0 = smov 127  }
 0x1d0   : > { %v945_v55 = vpop.permute.xlu0 %944 }
 0x1d1   : > { %v948_v57 = vrot.slane %v945_v55, 4 }
 0x1d3   : > { %v951_v58 = vsel %vm950_vm13, %v948_v57, %v945_v55 }
 0x1d4   : > { %959 = vst.msk [vmem:[#allocation3] sm:$0xff] %vm2952_vm14, %v951_v58 }
 0x1d7   : > { %v947_v59 = vpop.permute.xlu1 %946 }
 0x1d8   : > { %v949_v60 = vrot.slane %v947_v59, 4 }
 0x1da   : > { %v953_v61 = vsel %vm952_vm15, %v948_v57, %v949_v60 }
 0x1db   : > { %v964_v62 = vld [vmem:[#allocation3] sm:$0xff]  ;;  %v954_v63 = vsel %vm950_vm13, %v953_v61, %v947_v59 }
 0x1dc   : > { %v968_v0 = vunpack.c.l.b16 %v964_v62  ;;  %v969_v1 = vunpack.c.h.b16 %v964_v62  ;;  %963 = vst.msk [vmem:[#allocation3 + $0x8] sm:$0xff] %vm2960_vm2, %v954_v63 }
 0x1de   : > { %v2968_v2 = vpack.c.b16 %v969_v1, %v969_v1  ;;  %v2970_v3 = vpack.c.b16 %v968_v0, %v968_v0 }
 0x1e0   : > { %1014 = vrot.lane.b32.xlu1 %v2968_v2, %s3729_s21  ;;  %1062 = vrot.lane.b32.xlu0 %v2968_v2, %s3727_s25 }
 0x1e1   : > { %1060 = vrot.lane.b32.xlu2 %v2970_v3, %s3727_s25 }
 0x1e3   : > { %v965_v4 = vld [vmem:[#allocation3 + $0x8] sm:$0xff] }
 0x1e4   : > { %v970_v5 = vunpack.c.l.b16 %v965_v4  ;;  %v971_v7 = vunpack.c.h.b16 %v965_v4 }
 0x1e6   : > { %v2988_v6 = vpack.c.b16 %v970_v5, %v970_v5  ;;  %v3006_v8 = vpack.c.b16 %v971_v7, %v971_v7 }
 0x1e8   : > { %1026 = vrot.lane.b32.xlu1 %v2968_v2, %s3723_s26  ;;  %1038 = vrot.lane.b32.xlu0 %v2968_v2, %s3731_s30  ;;  %s2694_s26 = smov 126  }
 0x1e9   : > { %1036 = vrot.lane.b32.xlu2 %v2970_v3, %s3731_s30 }
 0x1f0   : > { %1050 = vrot.lane.b32.xlu0 %v2968_v2, %s2692_s27  ;;  %976 = vrot.lane.b32.xlu1 %v2970_v3, %s3725_s0  ;;  %s2695_s0 = smov 104  }
 0x1f1   : > { %1048 = vrot.lane.b32.xlu2 %v2970_v3, %s2692_s27 }
 0x1f8   : > { %1064 = vrot.lane.b32.xlu1 %v2988_v6, %s3727_s25  ;;  %1012 = vrot.lane.b32.xlu0 %v2970_v3, %s3729_s21  ;;  %s3765_s25 = smov 127   ;;  %s3766_s21 = smov 78  }
 0x1f9   : > { %988 = vrot.lane.b32.xlu2 %v2970_v3, %s2694_s26 }
 0x200   : > { %1040 = vrot.lane.b32.xlu1 %v2988_v6, %s3731_s30  ;;  %1024 = vrot.lane.b32.xlu0 %v2970_v3, %s3764_s5 }
 0x201   : > { %1000 = vrot.lane.b32.xlu2 %v2970_v3, %s2695_s0 }
 0x208   : > { %1052 = vrot.lane.b32.xlu1 %v2988_v6, %s2692_s27  ;;  %990 = vrot.lane.b32.xlu0 %v2968_v2, %s2694_s26 }
 0x209   : > { %978 = vrot.lane.b32.xlu2 %v2968_v2, %s3765_s25 }
 0x210   : > { %1054 = vrot.lane.b32.xlu1 %v3006_v8, %s2692_s27  ;;  %1002 = vrot.lane.b32.xlu0 %v2968_v2, %s2695_s0  ;;  %s3773_s27 = smov 124  }
 0x211   : > { %1066 = vrot.lane.b32.xlu2 %v3006_v8, %s3766_s21 }
 0x218   : > { %992 = vrot.lane.b32.xlu1 %v2988_v6, %s2694_s26  ;;  %1042 = vrot.lane.b32.xlu0 %v3006_v8, %s3731_s30 }
 0x219   : > { %1016 = vrot.lane.b32.xlu2 %v2988_v6, %s3767_s28 }
 0x220   : > { %1004 = vrot.lane.b32.xlu1 %v2988_v6, %s2695_s0  ;;  %1030 = vrot.lane.b32.xlu0 %v3006_v8, %s3764_s5 }
 0x221   : > { %1028 = vrot.lane.b32.xlu2 %v2988_v6, %s3764_s5  ;;  %s2696_s5 = smov 57  }
 0x228   : > { %994 = vrot.lane.b32.xlu1 %v3006_v8, %s2694_s26  ;;  %980 = vrot.lane.b32.xlu0 %v2988_v6, %s3765_s25 }
 0x229   : > { %1018 = vrot.lane.b32.xlu2 %v3006_v8, %s3767_s28  ;;  %s3733_s28 = smov 32  }
 0x230   : > { %982 = vrot.lane.b32.xlu0 %v3006_v8, %s3765_s25  ;;  %s3772_s25 = smov 76  }
 0x231   : > { %1006 = vrot.lane.b32.xlu2 %v3006_v8, %s2695_s0  ;;  %s3771_s0 = smov 96  }
 0x23b   : > { %v1061_v9 = vpop.permute.xlu2 %1060 }
 0x243   : > { %v1037_v10 = vpop.permute.xlu2 %1036 }
 0x24b   : > { %v1049_v11 = vpop.permute.xlu2 %1048 }
 0x252   : > { %v3032_v12 = vpop.permute.xlu1 %1014  ;;  %v1063_v13 = vpop.permute.xlu0 %1062 }
 0x253   : > { %v989_v14 = vpop.permute.xlu2 %988  ;;  %v1069_v15 = vsel %vm1068_vm3, %v1061_v9, %v1063_v13 }
 0x254   : > { %1169 = vrot.lane.b32.xlu1 %v1069_v15, %s2696_s5 }
 0x25a   : > { %v3036_v16 = vpop.permute.xlu1 %1026  ;;  %v1039_v17 = vpop.permute.xlu0 %1038 }
 0x25b   : > { %v1001_v18 = vpop.permute.xlu2 %1000  ;;  %v1045_v21 = vsel %vm1044_vm4, %v1037_v10, %v1039_v17 }
 0x262   : > { %v1051_v19 = vpop.permute.xlu0 %1050  ;;  %v977_v20 = vpop.permute.xlu1 %976 }
 0x263   : > { %v1057_v22 = vsel %vm1056_vm5, %v1049_v11, %v1051_v19  ;;  %v3042_v24 = vpop.permute.xlu2 %978 }
 0x264   : > { %v1110_v23 = vsel %vm952_vm15, %v1045_v21, %v1057_v22  ;;  %v985_v25 = vsel %vm984_vm6, %v977_v20, %v3042_v24 }
 0x265   : > { %1161 = vrot.lane.b32.xlu0 %v1110_v23, %s2696_s5  ;;  %v1074_v28 = vsel %vm952_vm15, %v2970_v3, %v985_v25 }
 0x26a   : > { %v1065_v26 = vpop.permute.xlu1 %1064  ;;  %v1013_v27 = vpop.permute.xlu0 %1012 }
 0x26b   : > { %v1067_v29 = vpop.permute.xlu2 %1066  ;;  %v1021_v33 = vsel %vm1020_vm7, %v1013_v27, %v3032_v12  ;;  %v1070_v57 = vsel %vm1068_vm3, %v1063_v13, %v1065_v26 }
 0x26c   : > { %v1071_v4 = vsel %vm1068_vm3, %v1065_v26, %v1067_v29 }
 0x26d   : > { %1137 = vrot.lane.b32.xlu0 %v1074_v28, %s2696_s5 }
 0x272   : > { %v1041_v31 = vpop.permute.xlu1 %1040  ;;  %v1025_v32 = vpop.permute.xlu0 %1024 }
 0x273   : > { %v1033_v34 = vsel %vm1032_vm8, %v1025_v32, %v3036_v16  ;;  %v1017_v38 = vpop.permute.xlu2 %1016  ;;  %v1046_v61 = vsel %vm1044_vm4, %v1039_v17, %v1041_v31 }
 0x274   : > { %v1098_v35 = vsel %vm952_vm15, %v1021_v33, %v1033_v34  ;;  %v1022_v20 = vsel %vm1020_vm7, %v3032_v12, %v1017_v38  ;;  %v1266_v12 = vld [vmem:[%s3768_s8] sm:$0xff]  ;;  %s2712_s8 = smov 24  }
 0x275   : > { %1153 = vrot.lane.b32.xlu1 %v1098_v35, %s2696_s5  ;;  %1175 = vrot.lane.b32.xlu0 %v1067_v29, %s2696_s5 }
 0x27a   : > { %v1053_v36 = vpop.permute.xlu1 %1052  ;;  %v991_v37 = vpop.permute.xlu0 %990 }
 0x27b   : > { %v997_v45 = vsel %vm996_vm9, %v989_v14, %v991_v37  ;;  %v1029_v49 = vpop.permute.xlu2 %1028  ;;  %v1058_v59 = vsel %vm1056_vm5, %v1051_v19, %v1053_v36 }
 0x27c   : > { %v1113_v3 = vsel %vm952_vm15, %v1046_v61, %v1058_v59  ;;  %v1034_v19 = vsel %vm1032_vm8, %v3036_v16, %v1029_v49 }
 0x27d   : > { %v1101_v22 = vsel %vm952_vm15, %v1022_v20, %v1034_v19 }
 0x282   : > { %v1055_v41 = vpop.permute.xlu1 %1054  ;;  %v1003_v42 = vpop.permute.xlu0 %1002 }
 0x283   : > { %v1009_v46 = vsel %vm1008_vm0, %v1001_v18, %v1003_v42  ;;  %v1059_v53 = vsel %vm1056_vm5, %v1053_v36, %v1055_v41  ;;  %v1019_v60 = vpop.permute.xlu2 %1018  ;;  %vm1328_vm5 = vcmask 1014784  }
 0x284   : > { %v1086_v47 = vsel %vm952_vm15, %v997_v45, %v1009_v46  ;;  %v1023_v9 = vsel %vm1020_vm7, %v1017_v38, %v1019_v60  ;;  %vm1396_vm7 = vcmask 244736  }
 0x285   : > { %1145 = vrot.lane.b32.xlu2 %v1086_v47, %s2696_s5 }
 0x28a   : > { %v993_v50 = vpop.permute.xlu1 %992  ;;  %v1043_v51 = vpop.permute.xlu0 %1042 }
 0x28b   : > { %v1047_v54 = vsel %vm1044_vm4, %v1041_v31, %v1043_v51  ;;  %v1119_v55 = vsel %vm952_vm15, %v1043_v51, %v1055_v41  ;;  %v998_v0 = vsel %vm996_vm9, %v991_v37, %v993_v50  ;;  %v1007_v10 = vpop.permute.xlu2 %1006 }
 0x28c   : > { %1167 = vrot.lane.b32.xlu1 %v1119_v55, %s2696_s5  ;;  %v1116_v58 = vsel %vm952_vm15, %v1047_v54, %v1059_v53  ;;  %v1257_v53 = vld [vmem:[%s3769_s7] sm:$0xff]  ;;  %s3780_s7 = sld [smem:[#allocation10_spill]] }
 0x28d   : > { %1171 = vrot.lane.b32.xlu2 %v1070_v57, %s2696_s5  ;;  %1165 = vrot.lane.b32.xlu0 %v1116_v58, %s2696_s5 }
 0x292   : > { %v1005_v62 = vpop.permute.xlu1 %1004  ;;  %v1031_v63 = vpop.permute.xlu0 %1030 }
 0x293   : > { %v1010_v1 = vsel %vm1008_vm0, %v1003_v42, %v1005_v62  ;;  %v1035_v7 = vsel %vm1032_vm8, %v1029_v49, %v1031_v63  ;;  %v1107_v17 = vsel %vm952_vm15, %v1019_v60, %v1031_v63  ;;  %v1011_v26 = vsel %vm1008_vm0, %v1005_v62, %v1007_v10 }
 0x294   : > { %1163 = vrot.lane.b32.xlu1 %v1113_v3, %s2696_s5  ;;  %v1089_v5 = vsel %vm952_vm15, %v998_v0, %v1010_v1  ;;  %v1104_v14 = vsel %vm952_vm15, %v1023_v9, %v1035_v7  ;;  %v1120_v7 = vld [vmem:[%s3770_s6] sm:$0xf]  ;;  %vm1750_vm8 = vcmask 867328   ;;  %vm1726_vm0 = vcmask 916480  }
 0x295   : > { %1173 = vrot.lane.b32.xlu2 %v1071_v4, %s2696_s5  ;;  %1147 = vrot.lane.b32.xlu0 %v1089_v5, %s2696_s5 }
 0x29a   : > { %v995_v11 = vpop.permute.xlu1 %994  ;;  %v981_v13 = vpop.permute.xlu0 %980 }
 0x29b   : > { %v1095_v15 = vsel %vm952_vm15, %v995_v11, %v1007_v10  ;;  %v986_v18 = vsel %vm984_vm6, %v3042_v24, %v981_v13  ;;  %v999_v24 = vsel %vm996_vm9, %v993_v50, %v995_v11 }
 0x29c   : > { %1157 = vrot.lane.b32.xlu1 %v1104_v14, %s2696_s5  ;;  %v1077_v21 = vsel %vm952_vm15, %v2968_v2, %v986_v18  ;;  %v1092_v2 = vsel %vm952_vm15, %v999_v24, %v1011_v26 }
 0x29d   : > { %1159 = vrot.lane.b32.xlu2 %v1107_v17, %s2696_s5  ;;  %1151 = vrot.lane.b32.xlu0 %v1095_v15, %s2696_s5 }
 0x2a2   : > { %v983_v23 = vpop.permute.xlu0 %982 }
 0x2a3   : > { %v987_v25 = vsel %vm984_vm6, %v981_v13, %v983_v23  ;;  %v1083_v27 = vsel %vm952_vm15, %v3006_v8, %v983_v23  ;;  %vm1384_vm6 = vcmask 261120  }
 0x2a4   : > { %1139 = vrot.lane.b32.xlu1 %v1077_v21, %s2696_s5  ;;  %v1080_v16 = vsel %vm952_vm15, %v2988_v6, %v987_v25 }
 0x2a5   : > { %1155 = vrot.lane.b32.xlu2 %v1101_v22, %s2696_s5  ;;  %1260 = vperm.xlu0 %2605, %v1257_v53  }
 0x2ac   : > { %1141 = vrot.lane.b32.xlu1 %v1080_v16, %s2696_s5 }
 0x2ad   : > { %1149 = vrot.lane.b32.xlu2 %v1092_v2, %s2696_s5 }
 0x2b4   : > { %1269 = vperm.xlu1 %2603, %v1266_v12  }
 0x2b5   : > { %1143 = vrot.lane.b32.xlu2 %v1083_v27, %s2696_s5  ;;  %s3774_s5 = smov 28  }
 0x2c6   : > { %v1170_v6 = vpop.permute.xlu1 %1169 }
 0x2d7   : > { %v1162_v28 = vpop.permute.xlu0 %1161 }
 0x2df   : > { %v1146_v29 = vpop.permute.xlu2 %1145  ;;  %v1138_v31 = vpop.permute.xlu0 %1137 }
 0x2e7   : > { %v1172_v32 = vpop.permute.xlu2 %1171  ;;  %v1176_v35 = vpop.permute.xlu0 %1175 }
 0x2e8   : > { %v1190_v33 = vsel %vm1177_vm10, %v1170_v6, %v1172_v32  ;;  %v1154_v42 = vpop.permute.xlu1 %1153 }
 0x2e9   : > { %v1210_v34 = vsel %vm952_vm15, %v1190_v33, 0 }
 0x2ea   : > { %1221 = vmatpush.bf16.msra.mxu3 %v1210_v34 }
 0x2ef   : > { %v1174_v36 = vpop.permute.xlu2 %1173 }
 0x2f0   : > { %v1191_v37 = vsel %vm1177_vm10, %v1172_v32, %v1174_v36  ;;  %v1192_v38 = vsel %vm1177_vm10, %v1174_v36, %v1176_v35 }
 0x2f1   : > { %v1213_v8 = vsel %vm952_vm15, %v1191_v37, 0  ;;  %v1216_v41 = vsel %vm952_vm15, %v1192_v38, 0 }
 0x2f2   : > { %1234 = vmatpush.bf16.msrb.mxu0 %v1213_v8  ;;  %1247 = vmatpush.bf16.msrb.mxu1 %v1216_v41 }
 0x2f7   : > { %v1160_v45 = vpop.permute.xlu2 %1159 }
 0x2fe   : > { %v1168_v46 = vpop.permute.xlu1 %1167 }
 0x2ff   : > { %v1166_v47 = vpop.permute.xlu0 %1165  ;;  %v1156_v50 = vpop.permute.xlu2 %1155 }
 0x300   : > { %v1189_v49 = vsel %vm1177_vm10, %v1166_v47, %v1168_v46  ;;  %v1184_v58 = vsel %vm1177_vm10, %v1154_v42, %v1156_v50 }
 0x301   : > { %1248 = vmatpush.bf16.msrb.mxu1 %v1189_v49 }
 0x306   : > { %v1164_v51 = vpop.permute.xlu1 %1163 }
 0x307   : > { %v1148_v54 = vpop.permute.xlu0 %1147  ;;  %v1187_v55 = vsel %vm1177_vm10, %v1162_v28, %v1164_v51  ;;  %v1188_v57 = vsel %vm1177_vm10, %v1164_v51, %v1166_v47  ;;  %v1150_v63 = vpop.permute.xlu2 %1149 }
 0x308   : > { %1222 = vmatpush.bf16.msra.mxu3 %v1187_v55  ;;  %1235 = vmatpush.bf16.msrb.mxu0 %v1188_v57  ;;  %v1181_v60 = vsel %vm1177_vm10, %v1146_v29, %v1148_v54  ;;  %v1182_v1 = vsel %vm1177_vm10, %v1148_v54, %v1150_v63 }
 0x30c   : > { %1223 = vmatpush.bf16.msra.mxu3 %v1184_v58 }
 0x30e   : > { %v1158_v59 = vpop.permute.xlu1 %1157 }
 0x30f   : > { %v1185_v61 = vsel %vm1177_vm10, %v1156_v50, %v1158_v59  ;;  %v1186_v62 = vsel %vm1177_vm10, %v1158_v59, %v1160_v45  ;;  %v1152_v0 = vpop.permute.xlu0 %1151  ;;  %v1144_v9 = vpop.permute.xlu2 %1143 }
 0x310   : > { %1224 = vmatpush.bf16.msra.mxu3 %v1181_v60  ;;  %1236 = vmatpush.bf16.msrb.mxu0 %v1185_v61  ;;  %v1183_v3 = vsel %vm1177_vm10, %v1150_v63, %v1152_v0 }
 0x311   : > { %1249 = vmatpush.bf16.msrb.mxu1 %v1186_v62 }
 0x314   : > { %1237 = vmatpush.bf16.msrb.mxu0 %v1182_v1 }
 0x315   : > { %1250 = vmatpush.bf16.msrb.mxu1 %v1183_v3 }
 0x316   : > { %v1140_v4 = vpop.permute.xlu1 %1139 }
 0x317   : > { %v1178_v5 = vsel %vm1177_vm10, %v1138_v31, %v1140_v4  ;;  %v1261_v14 = vpop.permute.xlu0 %1260 }
 0x318   : > { %1225 = vmatpush.bf16.msra.mxu3 %v1178_v5 }
 0x31b   : > { %2488 = vmatmul.msk.bf16.vlgmr.msra.gmra.mxu3 %vm1205_vm11, %v1120_v7 }
 0x31e   : > { %v1142_v10 = vpop.permute.xlu1 %1141 }
 0x31f   : > { %v1179_v11 = vsel %vm1177_vm10, %v1140_v4, %v1142_v10  ;;  %v1180_v13 = vsel %vm1177_vm10, %v1142_v10, %v1144_v9  ;;  %vm1738_vm10 = vcmask 891904  }
 0x320   : > { %1238 = vmatpush.bf16.msrb.mxu0 %v1179_v11  ;;  %1251 = vmatpush.bf16.msrb.mxu1 %v1180_v13 }
 0x323   : > { %2489 = vmatmul.msk.bf16.vlgmr.msrb.gmra.mxu0 %vm1205_vm11, %v1120_v7  ;;  %2490 = vmatmul.msk.bf16.vlgmr.msrb.gmra.mxu1 %vm1205_vm11, %v1120_v7 }
 0x326   : > { %v1270_v17 = vpop.permute.xlu1 %1269 }
 0x39e   : > { %v1227_v15 = vpop.f32.mrf.mxu3 }
 0x39f   : > { %v1263_v18 = vmul.f32 %v1261_v14, %v1227_v15 }
 0x3a0   : > { %v1240_v19 = vpop.f32.mrf.mxu0  ;;  %v1253_v20 = vpop.f32.mrf.mxu1 }
 0x3a1   : > { %v1272_v21 = vadd.f32 %v1270_v17, %v1263_v18  ;;  %v1264_v22 = vmul.f32 %v1261_v14, %v1240_v19  ;;  %v1265_v23 = vmul.f32 %v1261_v14, %v1253_v20 }
 0x3a3   : > { %v1273_v25 = vadd.f32 %v1270_v17, %v1264_v22  ;;  %v1274_v24 = vadd.f32 %v1270_v17, %v1265_v23  ;;  %v1275_v26 = vmul.f32 %v1272_v21, %v2930_v39 }
 0x3a5   : > { %v1276_v16 = vmul.f32 %v1273_v25, %v2932_v40  ;;  %v1277_v2 = vmul.f32 %v1274_v24, %v2942_v48 }
 0x3a6   : > { %v1229_v12 = vpop.f32.mrf.mxu3 }
 0x3a7   : > { %v3141_v27 = vpack.c.bf16 %v1277_v2, %v1277_v2  ;;  %v3143_v28 = vpack.c.bf16 %v1276_v16, %v1275_v26 }
 0x3a8   : > { %v1242_v29 = vpop.f32.mrf.mxu0  ;;  %v1255_v31 = vpop.f32.mrf.mxu1 }
 0x3a9   : > { %1284 = vrot.lane.b32.xlu1 %v3141_v27, %s3771_s0  ;;  %1282 = vrot.lane.b32.xlu2 %v3143_v28, %s3771_s0 }
 0x403   : > { %v1283_v6 = vpop.permute.xlu2 %1282 }
 0x404   : > { %v1286_v32 = vrot.slane %v1283_v6, 4 }
 0x406   : > { %v1288_v33 = vsel %vm950_vm13, %v1286_v32, %v1283_v6 }
 0x407   : > { %1293 = vst.msk [vmem:[#allocation3] sm:$0xff] %vm2952_vm14, %v1288_v33 }
 0x40e   : > { %v1295_v34 = vld [vmem:[#allocation3] sm:$0xff] }
 0x40f   : > { %v1302_v35 = vunpack.c.h.b16 %v1295_v34  ;;  %v1301_v36 = vunpack.c.l.b16 %v1295_v34 }
 0x411   : > { %v3152_v37 = vpack.c.b16 %v1302_v35, %v1302_v35  ;;  %v3154_v38 = vpack.c.b16 %v1301_v36, %v1301_v36 }
 0x413   : > { %1356 = vrot.lane.b32.xlu2 %v3152_v37, %s3772_s25  ;;  %1345 = vrot.lane.b32.xlu1 %v3152_v37, %s3766_s21 }
 0x414   : > { %1343 = vrot.lane.b32.xlu0 %v3154_v38, %s3766_s21 }
 0x41b   : > { %v1285_v8 = vpop.permute.xlu1 %1284  ;;  %1322 = vrot.lane.b32.xlu2 %v3152_v37, %s3773_s27  ;;  %1354 = vrot.lane.b32.xlu1 %v3154_v38, %s3772_s25 }
 0x41c   : > { %v1287_v41 = vrot.slane %v1285_v8, 4  ;;  %1334 = vrot.lane.b32.xlu0 %v3152_v37, %s3731_s30 }
 0x41e   : > { %v1289_v42 = vsel %vm952_vm15, %v1286_v32, %v1287_v41 }
 0x41f   : > { %v1290_v45 = vsel %vm950_vm13, %v1289_v42, %v1285_v8 }
 0x420   : > { %1294 = vst.msk [vmem:[#allocation3 + $0x8] sm:$0xff] %vm2960_vm2, %v1290_v45 }
 0x423   : > { %1332 = vrot.lane.b32.xlu2 %v3154_v38, %s3731_s30  ;;  %1320 = vrot.lane.b32.xlu1 %v3154_v38, %s3773_s27  ;;  %s2698_s30 = smov 30  }
 0x424   : > { %1309 = vrot.lane.b32.xlu0 %v3154_v38, %s2694_s26 }
 0x427   : > { %v1297_v46 = vld [vmem:[#allocation3 + $0x4] sm:$0xff]  ;;  %v1298_v53 = vld [vmem:[#allocation3 + $0xc] sm:$0xff] }
 0x428   : > { %v1368_v47 = vunpack.c.l.b16 %v1297_v46  ;;  %v1369_v49 = vunpack.c.h.b16 %v1297_v46  ;;  %v1370_v54 = vunpack.c.l.b16 %v1298_v53  ;;  %v1296_v57 = vld [vmem:[#allocation3 + $0x8] sm:$0xff]  ;;  %v1371_v58 = vunpack.c.h.b16 %v1298_v53 }
 0x429   : > { %v1304_v59 = vunpack.c.h.b16 %v1296_v57  ;;  %v1303_v62 = vunpack.c.l.b16 %v1296_v57 }
 0x42a   : > { %v1372_v50 = vpack.c.b16 %v1368_v47, %v1368_v47  ;;  %v1373_v51 = vpack.c.b16 %v1369_v49, %v1369_v49  ;;  %v1374_v55 = vpack.c.b16 %v1370_v54, %v1370_v54  ;;  %v1375_v60 = vpack.c.b16 %v1371_v58, %v1371_v58 }
 0x42b   : > { %1311 = vrot.lane.b32.xlu1 %v3152_v37, %s2694_s26  ;;  %v3186_v61 = vpack.c.b16 %v1304_v59, %v1304_v59  ;;  %v3191_v63 = vpack.c.b16 %v1303_v62, %v1303_v62 }
 0x42c   : > { %1400 = vrot.lane.b32.xlu2 %v1372_v50, %s3774_s5  ;;  %1402 = vrot.lane.b32.xlu0 %v1373_v51, %s3774_s5 }
 0x433   : > { %1404 = vrot.lane.b32.xlu1 %v1374_v55, %s3774_s5 }
 0x434   : > { %1376 = vrot.lane.b32.xlu2 %v1372_v50, %s3733_s28  ;;  %1378 = vrot.lane.b32.xlu0 %v1373_v51, %s3733_s28 }
 0x43b   : > { %1380 = vrot.lane.b32.xlu1 %v1374_v55, %s3733_s28 }
 0x43c   : > { %1388 = vrot.lane.b32.xlu2 %v1372_v50, %s2698_s30  ;;  %1390 = vrot.lane.b32.xlu0 %v1373_v51, %s2698_s30 }
 0x443   : > { %1392 = vrot.lane.b32.xlu1 %v1374_v55, %s2698_s30 }
 0x444   : > { %1406 = vrot.lane.b32.xlu2 %v1375_v60, %s3774_s5  ;;  %1349 = vrot.lane.b32.xlu0 %v3186_v61, %s3766_s21  ;;  %s3775_s5 = smov 80  }
 0x44b   : > { %1360 = vrot.lane.b32.xlu1 %v3186_v61, %s3772_s25 }
 0x44c   : > { %1347 = vrot.lane.b32.xlu2 %v3191_v63, %s3766_s21  ;;  %1358 = vrot.lane.b32.xlu0 %v3191_v63, %s3772_s25  ;;  %s2699_s21 = smov 82   ;;  %s2701_s25 = smov 53  }
 0x453   : > { %1326 = vrot.lane.b32.xlu1 %v3186_v61, %s3773_s27 }
 0x454   : > { %1382 = vrot.lane.b32.xlu2 %v1375_v60, %s3733_s28  ;;  %1394 = vrot.lane.b32.xlu0 %v1375_v60, %s2698_s30  ;;  %s2700_s30 = smov 122   ;;  %s2705_s28 = smov 106  }
 0x45b   : > { %1336 = vrot.lane.b32.xlu1 %v3191_v63, %s3775_s5 }
 0x45c   : > { %1338 = vrot.lane.b32.xlu2 %v3186_v61, %s3775_s5  ;;  %1324 = vrot.lane.b32.xlu0 %v3191_v63, %s3773_s27  ;;  %s3739_s27 = smov 56  }
 0x464   : > { %1313 = vrot.lane.b32.xlu2 %v3191_v63, %s2694_s26  ;;  %1315 = vrot.lane.b32.xlu0 %v3186_v61, %s2694_s26  ;;  %s3737_s26 = smov 125  }
 0x46d   : > { %v3212_v0 = vpop.permute.xlu2 %1356 }
 0x475   : > { %v3214_v1 = vpop.permute.xlu2 %1322 }
 0x47d   : > { %v1333_v3 = vpop.permute.xlu2 %1332 }
 0x485   : > { %v3216_v4 = vpop.permute.xlu1 %1345 }
 0x486   : > { %v1344_v5 = vpop.permute.xlu0 %1343  ;;  %v1401_v7 = vpop.permute.xlu2 %1400 }
 0x487   : > { %1509 = vrot.lane.b32.xlu1 %v1401_v7, %s2699_s21  ;;  %v1351_v25 = vsel %vm1068_vm3, %v1344_v5, %v3216_v4 }
 0x48d   : > { %v1355_v9 = vpop.permute.xlu1 %1354 }
 0x48e   : > { %v3219_v10 = vpop.permute.xlu0 %1334  ;;  %v1377_v11 = vpop.permute.xlu2 %1376  ;;  %v1363_v21 = vsel %vm1362_vm1, %v1355_v9, %v3212_v0 }
 0x48f   : > { %v1438_v2 = vsel %vm952_vm15, %v1351_v25, %v1363_v21  ;;  %v1340_v31 = vsel %vm1044_vm4, %v1333_v3, %v3219_v10 }
 0x495   : > { %v1321_v13 = vpop.permute.xlu1 %1320 }
 0x496   : > { %v1310_v14 = vpop.permute.xlu0 %1309  ;;  %v1389_v15 = vpop.permute.xlu2 %1388  ;;  %v1329_v12 = vsel %vm1328_vm5, %v1321_v13, %v3214_v1 }
 0x497   : > { %v1450_v17 = vsel %vm952_vm15, %v1377_v11, %v1389_v15  ;;  %v1426_v34 = vsel %vm952_vm15, %v1329_v12, %v1340_v31 }
 0x498   : > { %1501 = vrot.lane.b32.xlu1 %v1450_v17, %s2699_s21 }
 0x49d   : > { %v3223_v18 = vpop.permute.xlu1 %1311 }
 0x49e   : > { %v1403_v19 = vpop.permute.xlu0 %1402  ;;  %v1407_v22 = vpop.permute.xlu2 %1406  ;;  %v1317_v29 = vsel %vm996_vm9, %v1310_v14, %v3223_v18 }
 0x49f   : > { %v1409_v20 = vsel %vm1408_vm12, %v1401_v7, %v1403_v19  ;;  %v1414_v33 = vsel %vm952_vm15, %v3154_v38, %v1317_v29 }
 0x4a0   : > { %1511 = vrot.lane.b32.xlu2 %v1409_v20, %s2699_s21 }
 0x4a5   : > { %v1405_v23 = vpop.permute.xlu1 %1404 }
 0x4a6   : > { %v1379_v24 = vpop.permute.xlu0 %1378  ;;  %v1411_v26 = vsel %vm1408_vm12, %v1405_v23, %v1407_v22  ;;  %v1410_v16 = vsel %vm1408_vm12, %v1403_v19, %v1405_v23  ;;  %v1348_v41 = vpop.permute.xlu2 %1347  ;;  %vm1859_vm12 = vcmask 875520  }
 0x4a7   : > { %1515 = vrot.lane.b32.xlu1 %v1411_v26, %s2699_s21  ;;  %1513 = vrot.lane.b32.xlu0 %v1410_v16, %s2699_s21  ;;  %v1385_v35 = vsel %vm1384_vm6, %v1377_v11, %v1379_v24  ;;  %v1352_v9 = vsel %vm1068_vm3, %v3216_v4, %v1348_v41  ;;  %v1596_v26 = vld [vmem:[%s3703_s10] sm:$0xff] }
 0x4a8   : > { %1493 = vrot.lane.b32.xlu2 %v1438_v2, %s2699_s21 }
 0x4ad   : > { %v1381_v6 = vpop.permute.xlu1 %1380 }
 0x4ae   : > { %v1391_v32 = vpop.permute.xlu0 %1390  ;;  %v1383_v47 = vpop.permute.xlu2 %1382  ;;  %v1386_v55 = vsel %vm1384_vm6, %v1379_v24, %v1381_v6 }
 0x4af   : > { %v1397_v36 = vsel %vm1396_vm7, %v1389_v15, %v1391_v32  ;;  %1477 = vrot.lane.b32.xlu1 %v1414_v33, %s2699_s21  ;;  %1485 = vrot.lane.b32.xlu0 %v1426_v34, %s2699_s21  ;;  %v1387_v60 = vsel %vm1384_vm6, %v1381_v6, %v1383_v47 }
 0x4b0   : > { %v1453_v8 = vsel %vm952_vm15, %v1385_v35, %v1397_v36 }
 0x4b1   : > { %1503 = vrot.lane.b32.xlu2 %v1453_v8, %s2699_s21 }
 0x4b5   : > { %v1393_v42 = vpop.permute.xlu1 %1392 }
 0x4b6   : > { %v1350_v45 = vpop.permute.xlu0 %1349  ;;  %v1398_v54 = vsel %vm1396_vm7, %v1391_v32, %v1393_v42  ;;  %v1339_v3 = vpop.permute.xlu2 %1338 }
 0x4b7   : > { %v1353_v50 = vsel %vm1068_vm3, %v1348_v41, %v1350_v45  ;;  %v1456_v59 = vsel %vm952_vm15, %v1386_v55, %v1398_v54  ;;  %vm1517_vm3 = vcmask 670720  }
 0x4bd   : > { %v1361_v46 = vpop.permute.xlu1 %1360 }
 0x4be   : > { %v1359_v38 = vpop.permute.xlu0 %1358  ;;  %v1447_v49 = vsel %vm952_vm15, %v1350_v45, %v1361_v46 }
 0x4bf   : > { %v1365_v51 = vsel %vm1362_vm1, %v1359_v38, %v1361_v46  ;;  %1499 = vrot.lane.b32.xlu0 %v1447_v49, %s2699_s21  ;;  %v1364_v7 = vsel %vm1362_vm1, %v3212_v0, %v1359_v38  ;;  %vm1964_vm1 = vcmask 64512  }
 0x4c0   : > { %v1444_v53 = vsel %vm952_vm15, %v1353_v50, %v1365_v51  ;;  %v1441_v17 = vsel %vm952_vm15, %v1352_v9, %v1364_v7  ;;  %v1460_v7 = vld [vmem:[%s3776_s9] sm:$0xf]  ;;  %s2713_s9 = smov 8  }
 0x4c1   : > { %1497 = vrot.lane.b32.xlu1 %v1444_v53, %s2699_s21 }
 0x4c5   : > { %v1327_v57 = vpop.permute.xlu1 %1326 }
 0x4c6   : > { %v1395_v58 = vpop.permute.xlu0 %1394  ;;  %v1435_v25 = vsel %vm952_vm15, %v1327_v57, %v1339_v3 }
 0x4c7   : > { %v1399_v62 = vsel %vm1396_vm7, %v1393_v42, %v1395_v58  ;;  %1505 = vrot.lane.b32.xlu0 %v1456_v59, %s2699_s21  ;;  %vm2276_vm7 = vcmask 261312  }
 0x4c8   : > { %v1459_v5 = vsel %vm952_vm15, %v1387_v60, %v1399_v62 }
 0x4c9   : > { %1507 = vrot.lane.b32.xlu2 %v1459_v5, %s2699_s21 }
 0x4cd   : > { %v1337_v11 = vpop.permute.xlu1 %1336 }
 0x4ce   : > { %v1341_v13 = vsel %vm1044_vm4, %v3219_v10, %v1337_v11  ;;  %v1342_v14 = vsel %vm1044_vm4, %v1337_v11, %v1339_v3  ;;  %v1325_v15 = vpop.permute.xlu0 %1324  ;;  %v1314_v10 = vpop.permute.xlu2 %1313  ;;  %vm1668_vm4 = vcmask 998400  }
 0x4cf   : > { %v1330_v19 = vsel %vm1328_vm5, %v3214_v1, %v1325_v15  ;;  %v1331_v20 = vsel %vm1328_vm5, %v1325_v15, %v1327_v57  ;;  %1495 = vrot.lane.b32.xlu0 %v1441_v17, %s2699_s21  ;;  %v1318_v21 = vsel %vm996_vm9, %v3223_v18, %v1314_v10  ;;  %v1605_v18 = vld [vmem:[%s3704_s11] sm:$0xff]  ;;  %vm2211_vm5 = vcmask 130112  }
 0x4d0   : > { %v1432_v0 = vsel %vm952_vm15, %v1331_v20, %v1342_v14  ;;  %v1429_v4 = vsel %vm952_vm15, %v1330_v19, %v1341_v13  ;;  %v1417_v1 = vsel %vm952_vm15, %v3152_v37, %v1318_v21 }
 0x4d1   : > { %1489 = vrot.lane.b32.xlu2 %v1432_v0, %s2699_s21  ;;  %1487 = vrot.lane.b32.xlu1 %v1429_v4, %s2699_s21 }
 0x4d6   : > { %v1316_v22 = vpop.permute.xlu0 %1315 }
 0x4d7   : > { %v1319_v23 = vsel %vm996_vm9, %v1314_v10, %v1316_v22  ;;  %v1423_v37 = vsel %vm952_vm15, %v3186_v61, %v1316_v22  ;;  %vm1656_vm9 = vcmask 1022976  }
 0x4d8   : > { %v1420_v24 = vsel %vm952_vm15, %v3191_v63, %v1319_v23 }
 0x4d9   : > { %1479 = vrot.lane.b32.xlu2 %v1417_v1, %s2699_s21  ;;  %1491 = vrot.lane.b32.xlu1 %v1435_v25, %s2699_s21 }
 0x4da   : > { %1481 = vrot.lane.b32.xlu0 %v1420_v24, %s2699_s21 }
 0x4e1   : > { %1608 = vperm.xlu1 %2603, %v1605_v18   ;;  %1483 = vrot.lane.b32.xlu2 %v1423_v37, %s2699_s21  ;;  %s3735_s21 = smov 50  }
 0x4e2   : > { %1599 = vperm.xlu0 %2605, %v1596_v26  }
 0x4f9   : > { %v1510_v63 = vpop.permute.xlu1 %1509 }
 0x4fa   : > { %v1512_v16 = vpop.permute.xlu2 %1511 }
 0x4fb   : > { %v1530_v2 = vsel %vm1517_vm3, %v1510_v63, %v1512_v16 }
 0x4fc   : > { %v1549_v12 = vsel %vm952_vm15, %v1530_v2, 0  ;;  %v2016_v2 = vunpack.c.l.b16 %v3143_v28 }
 0x4fd   : > { %1560 = vmatpush.bf16.msrb.mxu2 %v1549_v12 }
 0x502   : > { %v1494_v29 = vpop.permute.xlu2 %1493 }
 0x50a   : > { %v1502_v31 = vpop.permute.xlu1 %1501 }
 0x50b   : > { %v1504_v6 = vpop.permute.xlu2 %1503 }
 0x50c   : > { %v1527_v32 = vsel %vm1517_vm3, %v1502_v31, %v1504_v6  ;;  %v2019_v31 = vpack.c.b16 %v2016_v2, %v2016_v2 }
 0x50d   : > { %1561 = vmatpush.bf16.msrb.mxu2 %v1527_v32 }
 0x519   : > { %v1516_v33 = vpop.permute.xlu1 %1515  ;;  %v1514_v61 = vpop.permute.xlu0 %1513 }
 0x51a   : > { %v1532_v34 = vsel %vm1517_vm3, %v1514_v61, %v1516_v33  ;;  %v1531_v35 = vsel %vm1517_vm3, %v1512_v16, %v1514_v61 }
 0x51b   : > { %v1555_v36 = vsel %vm952_vm15, %v1532_v34, 0  ;;  %v1552_v8 = vsel %vm952_vm15, %v1531_v35, 0 }
 0x51c   : > { %1573 = vmatpush.bf16.msrb.mxu3 %v1552_v8  ;;  %1586 = vmatpush.bf16.msra.mxu0 %v1555_v36 }
 0x521   : > { %v1486_v41 = vpop.permute.xlu0 %1485  ;;  %v1478_v46 = vpop.permute.xlu1 %1477 }
 0x523   : > { %v1508_v42 = vpop.permute.xlu2 %1507 }
 0x52b   : > { %v1490_v50 = vpop.permute.xlu2 %1489 }
 0x531   : > { %v1500_v45 = vpop.permute.xlu0 %1499 }
 0x533   : > { %v1498_v51 = vpop.permute.xlu1 %1497  ;;  %v1480_v59 = vpop.permute.xlu2 %1479 }
 0x534   : > { %v1526_v53 = vsel %vm1517_vm3, %v1498_v51, %v1500_v45  ;;  %v1518_v3 = vsel %vm1517_vm3, %v1478_v46, %v1480_v59 }
 0x539   : > { %v1506_v47 = vpop.permute.xlu0 %1505 }
 0x53a   : > { %v1528_v38 = vsel %vm1517_vm3, %v1504_v6, %v1506_v47  ;;  %v1529_v49 = vsel %vm1517_vm3, %v1506_v47, %v1508_v42 }
 0x53b   : > { %1574 = vmatpush.bf16.msrb.mxu3 %v1528_v38  ;;  %1587 = vmatpush.bf16.msra.mxu0 %v1529_v49  ;;  %v1484_v14 = vpop.permute.xlu2 %1483 }
 0x53f   : > { %1588 = vmatpush.bf16.msra.mxu0 %v1526_v53 }
 0x541   : > { %v1496_v54 = vpop.permute.xlu0 %1495 }
 0x542   : > { %v1524_v55 = vsel %vm1517_vm3, %v1494_v29, %v1496_v54  ;;  %v1525_v57 = vsel %vm1517_vm3, %v1496_v54, %v1498_v51 }
 0x543   : > { %v1488_v58 = vpop.permute.xlu1 %1487  ;;  %1562 = vmatpush.bf16.msrb.mxu2 %v1524_v55  ;;  %1575 = vmatpush.bf16.msrb.mxu3 %v1525_v57 }
 0x544   : > { %v1521_v60 = vsel %vm1517_vm3, %v1486_v41, %v1488_v58  ;;  %v1522_v62 = vsel %vm1517_vm3, %v1488_v58, %v1490_v50 }
 0x547   : > { %1563 = vmatpush.bf16.msrb.mxu2 %v1521_v60  ;;  %1576 = vmatpush.bf16.msrb.mxu3 %v1522_v62 }
 0x54b   : > { %v1492_v5 = vpop.permute.xlu1 %1491  ;;  %1564 = vmatpush.bf16.msrb.mxu2 %v1518_v3 }
 0x54c   : > { %v1482_v9 = vpop.permute.xlu0 %1481  ;;  %v1523_v11 = vsel %vm1517_vm3, %v1490_v50, %v1492_v5 }
 0x54d   : > { %v1519_v13 = vsel %vm1517_vm3, %v1480_v59, %v1482_v9  ;;  %1589 = vmatpush.bf16.msra.mxu0 %v1523_v11  ;;  %v1520_v15 = vsel %vm1517_vm3, %v1482_v9, %v1484_v14  ;;  %vm2306_vm3 = vcmask 326912  }
 0x54e   : > { %1577 = vmatpush.bf16.msrb.mxu3 %v1519_v13  ;;  %2491 = vmatmul.msk.bf16.vlgmr.msrb.gmra.mxu2 %vm1205_vm11, %v1460_v7 }
 0x551   : > { %2492 = vmatmul.msk.bf16.vlgmr.msrb.gmra.mxu3 %vm1205_vm11, %v1460_v7  ;;  %1590 = vmatpush.bf16.msra.mxu0 %v1520_v15 }
 0x553   : > { %v1609_v10 = vpop.permute.xlu1 %1608 }
 0x554   : > { %2493 = vmatmul.msk.bf16.vlgmr.msra.gmra.mxu0 %vm1205_vm11, %v1460_v7  ;;  %v1600_v17 = vpop.permute.xlu0 %1599 }
 0x5d1   : > { %v1566_v19 = vpop.f32.mrf.mxu2  ;;  %v1592_v20 = vpop.f32.mrf.mxu0 }
 0x5d2   : > { %v1602_v0 = vmul.f32 %v1600_v17, %v1566_v19  ;;  %v1604_v4 = vmul.f32 %v1600_v17, %v1592_v20 }
 0x5d4   : > { %v1613_v21 = vadd.f32 %v1609_v10, %v1604_v4  ;;  %v1579_v22 = vpop.f32.mrf.mxu3  ;;  %v1611_v23 = vadd.f32 %v1609_v10, %v1602_v0 }
 0x5d5   : > { %v1603_v1 = vmul.f32 %v1600_v17, %v1579_v22 }
 0x5d6   : > { %v1616_v25 = vmul.f32 %v1613_v21, %v2942_v48  ;;  %v1614_v26 = vmul.f32 %v1611_v23, %v2930_v39 }
 0x5d7   : > { %v1612_v24 = vadd.f32 %v1609_v10, %v1603_v1 }
 0x5d8   : > { %v3324_v18 = vpack.c.bf16 %v1616_v25, %v1616_v25 }
 0x5d9   : > { %v1615_v37 = vmul.f32 %v1612_v24, %v2932_v40  ;;  %v1568_v63 = vpop.f32.mrf.mxu2  ;;  %v1594_v16 = vpop.f32.mrf.mxu0  ;;  %v2026_v40 = vsel %vm952_vm15, %v2019_v31, 0 }
 0x5da   : > { %1623 = vrot.lane.b32.xlu0 %v3324_v18, %s3771_s0 }
 0x5db   : > { %v3331_v12 = vpack.c.bf16 %v1615_v37, %v1614_v26 }
 0x5dc   : > { %v1581_v29 = vpop.f32.mrf.mxu3 }
 0x5dd   : > { %1621 = vrot.lane.b32.xlu2 %v3331_v12, %s3771_s0  ;;  %v1958_v48 = vunpack.c.l.b16 %v3331_v12 }
 0x5df   : > { %v1961_v6 = vpack.c.b16 %v1958_v48, %v1958_v48 }
 0x5e1   : > { %v1969_v39 = vsel %vm952_vm15, %v1961_v6, 0 }
 0x5e2   : > { %1984 = vmatpush.bf16.msrb.mxu0 %v1969_v39 }
 0x5e6   : > { %2041 = vmatpush.bf16.msra.mxu0 %v2026_v40 }
 0x637   : > { %v1622_v32 = vpop.permute.xlu2 %1621 }
 0x638   : > { %v1625_v33 = vrot.slane %v1622_v32, 4 }
 0x63a   : > { %v1627_v61 = vsel %vm950_vm13, %v1625_v33, %v1622_v32 }
 0x63b   : > { %1632 = vst.msk [vmem:[#allocation3] sm:$0xff] %vm2952_vm14, %v1627_v61  ;;  %vm1704_vm14 = vcmask 408576  }
 0x642   : > { %v1634_v34 = vld [vmem:[#allocation3] sm:$0xff] }
 0x643   : > { %v1640_v35 = vunpack.c.l.b16 %v1634_v34  ;;  %v1641_v36 = vunpack.c.h.b16 %v1634_v34 }
 0x645   : > { %v3341_v8 = vpack.c.b16 %v1640_v35, %v1640_v35  ;;  %v3343_v41 = vpack.c.b16 %v1641_v36, %v1641_v36 }
 0x647   : > { %1660 = vrot.lane.b32.xlu1 %v3341_v8, %s2700_s30  ;;  %1684 = vrot.lane.b32.xlu2 %v3341_v8, %s2701_s25 }
 0x648   : > { %1686 = vrot.lane.b32.xlu0 %v3343_v41, %s2701_s25 }
 0x64c   : > { %v1624_v56 = vpop.permute.xlu0 %1623 }
 0x64d   : > { %v1626_v42 = vrot.slane %v1624_v56, 4 }
 0x64f   : > { %v1628_v45 = vsel %vm952_vm15, %v1625_v33, %v1626_v42  ;;  %1672 = vrot.lane.b32.xlu1 %v3341_v8, %s3739_s27  ;;  %1696 = vrot.lane.b32.xlu2 %v3341_v8, %s3735_s21 }
 0x650   : > { %v1629_v46 = vsel %vm950_vm13, %v1628_v45, %v1624_v56  ;;  %1698 = vrot.lane.b32.xlu0 %v3343_v41, %s3735_s21  ;;  %s3741_s21 = smov 112   ;;  %vm1692_vm13 = vcmask 433152  }
 0x651   : > { %1633 = vst.msk [vmem:[#allocation3 + $0x8] sm:$0xff] %vm2960_vm2, %v1629_v46  ;;  %vm1680_vm2 = vcmask 457728  }
 0x657   : > { %1650 = vrot.lane.b32.xlu1 %v3343_v41, %s3737_s26  ;;  %1662 = vrot.lane.b32.xlu2 %v3343_v41, %s2700_s30 }
 0x658   : > { %1648 = vrot.lane.b32.xlu0 %v3341_v8, %s3737_s26  ;;  %v1637_v47 = vld [vmem:[#allocation3 + $0xc] sm:$0xff]  ;;  %v1636_v38 = vld [vmem:[#allocation3 + $0x4] sm:$0xff]  ;;  %s2707_s26 = smov 109  }
 0x659   : > { %v1712_v49 = vunpack.c.l.b16 %v1637_v47  ;;  %v1710_v50 = vunpack.c.l.b16 %v1636_v38  ;;  %v1711_v30 = vunpack.c.h.b16 %v1636_v38  ;;  %v1713_v55 = vunpack.c.h.b16 %v1637_v47  ;;  %v1635_v58 = vld [vmem:[#allocation3 + $0x8] sm:$0xff] }
 0x65a   : > { %v1642_v59 = vunpack.c.l.b16 %v1635_v58  ;;  %v1643_v62 = vunpack.c.h.b16 %v1635_v58 }
 0x65b   : > { %v1714_v51 = vpack.c.b16 %v1710_v50, %v1710_v50  ;;  %v1716_v53 = vpack.c.b16 %v1712_v49, %v1712_v49  ;;  %v1715_v54 = vpack.c.b16 %v1711_v30, %v1711_v30  ;;  %v1717_v57 = vpack.c.b16 %v1713_v55, %v1713_v55 }
 0x65c   : > { %v3372_v60 = vpack.c.b16 %v1642_v59, %v1642_v59  ;;  %v3379_v3 = vpack.c.b16 %v1643_v62, %v1643_v62 }
 0x65f   : > { %1674 = vrot.lane.b32.xlu2 %v3343_v41, %s3739_s27  ;;  %1742 = vrot.lane.b32.xlu1 %v1714_v51, %s2705_s28  ;;  %s3777_s27 = smov 50  }
 0x660   : > { %1746 = vrot.lane.b32.xlu0 %v1716_v53, %s2705_s28 }
 0x667   : > { %1744 = vrot.lane.b32.xlu2 %v1715_v54, %s2705_s28  ;;  %1718 = vrot.lane.b32.xlu1 %v1714_v51, %s3741_s21 }
 0x668   : > { %1722 = vrot.lane.b32.xlu0 %v1716_v53, %s3741_s21 }
 0x66f   : > { %1720 = vrot.lane.b32.xlu2 %v1715_v54, %s3741_s21  ;;  %1730 = vrot.lane.b32.xlu1 %v1714_v51, %s2707_s26 }
 0x670   : > { %1734 = vrot.lane.b32.xlu0 %v1716_v53, %s2707_s26 }
 0x677   : > { %1732 = vrot.lane.b32.xlu2 %v1715_v54, %s2707_s26  ;;  %1748 = vrot.lane.b32.xlu1 %v1717_v57, %s2705_s28  ;;  %s3778_s28 = smov 56  }
 0x678   : > { %1736 = vrot.lane.b32.xlu0 %v1717_v57, %s2707_s26  ;;  %s3779_s26 = smov 125  }
 0x67f   : > { %1724 = vrot.lane.b32.xlu2 %v1717_v57, %s3741_s21  ;;  %1688 = vrot.lane.b32.xlu1 %v3372_v60, %s2701_s25  ;;  %s3781_s21 = smov 32  }
 0x680   : > { %1664 = vrot.lane.b32.xlu0 %v3372_v60, %s2700_s30 }
 0x687   : > { %1702 = vrot.lane.b32.xlu2 %v3379_v3, %s3777_s27  ;;  %1700 = vrot.lane.b32.xlu1 %v3372_v60, %s3777_s27  ;;  %s2711_s27 = smov 16  }
 0x688   : > { %1676 = vrot.lane.b32.xlu0 %v3372_v60, %s3778_s28 }
 0x68f   : > { %1652 = vrot.lane.b32.xlu2 %v3372_v60, %s3779_s26  ;;  %1690 = vrot.lane.b32.xlu1 %v3379_v3, %s2701_s25  ;;  %s2710_s25 = smov 64  }
 0x690   : > { %1666 = vrot.lane.b32.xlu0 %v3379_v3, %s2700_s30  ;;  %s2708_s30 = smov 107  }
 0x697   : > { %1654 = vrot.lane.b32.xlu2 %v3379_v3, %s3779_s26  ;;  %1678 = vrot.lane.b32.xlu1 %v3379_v3, %s3778_s28 }
 0x6a1   : > { %v1685_v5 = vpop.permute.xlu2 %1684 }
 0x6a9   : > { %v1697_v7 = vpop.permute.xlu2 %1696 }
 0x6b1   : > { %v3397_v9 = vpop.permute.xlu2 %1662 }
 0x6b9   : > { %v1661_v11 = vpop.permute.xlu1 %1660  ;;  %v1675_v17 = vpop.permute.xlu2 %1674 }
 0x6ba   : > { %v1687_v13 = vpop.permute.xlu0 %1686  ;;  %v1669_v22 = vsel %vm1668_vm4, %v1661_v11, %v3397_v9 }
 0x6bb   : > { %v1693_v19 = vsel %vm1692_vm13, %v1685_v5, %v1687_v13 }
 0x6c1   : > { %v1673_v14 = vpop.permute.xlu1 %1672  ;;  %v1745_v1 = vpop.permute.xlu2 %1744 }
 0x6c2   : > { %v1699_v15 = vpop.permute.xlu0 %1698  ;;  %v1681_v4 = vsel %vm1680_vm2, %v1673_v14, %v1675_v17 }
 0x6c3   : > { %v1705_v20 = vsel %vm1704_vm14, %v1697_v7, %v1699_v15  ;;  %v1768_v23 = vsel %vm952_vm15, %v1669_v22, %v1681_v4 }
 0x6c4   : > { %v1780_v0 = vsel %vm952_vm15, %v1693_v19, %v1705_v20 }
 0x6c5   : > { %1835 = vrot.lane.b32.xlu2 %v1780_v0, %s2708_s30 }
 0x6c9   : > { %v3404_v10 = vpop.permute.xlu1 %1650  ;;  %v1721_v63 = vpop.permute.xlu2 %1720 }
 0x6ca   : > { %v1649_v21 = vpop.permute.xlu0 %1648 }
 0x6cb   : > { %v1657_v16 = vsel %vm1656_vm9, %v1649_v21, %v3404_v10 }
 0x6cc   : > { %v1756_v48 = vsel %vm952_vm15, %v3341_v8, %v1657_v16 }
 0x6cd   : > { %1827 = vrot.lane.b32.xlu2 %v1768_v23, %s2708_s30 }
 0x6d1   : > { %v1743_v25 = vpop.permute.xlu1 %1742  ;;  %v1733_v31 = vpop.permute.xlu2 %1732 }
 0x6d2   : > { %v1751_v24 = vsel %vm1750_vm8, %v1743_v25, %v1745_v1  ;;  %v1747_v26 = vpop.permute.xlu0 %1746  ;;  %v1938_v25 = vld [vmem:[%s3706_s13] sm:$0xff] }
 0x6d3   : > { %v1752_v37 = vsel %vm1750_vm8, %v1745_v1, %v1747_v26  ;;  %1851 = vrot.lane.b32.xlu0 %v1751_v24, %s2708_s30 }
 0x6d4   : > { %1853 = vrot.lane.b32.xlu1 %v1752_v37, %s2708_s30 }
 0x6d9   : > { %v1719_v2 = vpop.permute.xlu1 %1718  ;;  %v1725_v42 = vpop.permute.xlu2 %1724 }
 0x6da   : > { %v1723_v29 = vpop.permute.xlu0 %1722  ;;  %v1727_v39 = vsel %vm1726_vm0, %v1719_v2, %v1721_v63 }
 0x6db   : > { %1819 = vrot.lane.b32.xlu0 %v1756_v48, %s2708_s30  ;;  %v1728_v33 = vsel %vm1726_vm0, %v1721_v63, %v1723_v29  ;;  %v1729_v46 = vsel %vm1726_vm0, %v1723_v29, %v1725_v42 }
 0x6e1   : > { %v1731_v6 = vpop.permute.xlu1 %1730  ;;  %v1703_v50 = vpop.permute.xlu2 %1702 }
 0x6e2   : > { %v1739_v40 = vsel %vm1738_vm10, %v1731_v6, %v1733_v31  ;;  %v1735_v32 = vpop.permute.xlu0 %1734 }
 0x6e3   : > { %v1740_v61 = vsel %vm1738_vm10, %v1733_v31, %v1735_v32  ;;  %v1792_v34 = vsel %vm952_vm15, %v1727_v39, %v1739_v40 }
 0x6e4   : > { %1843 = vrot.lane.b32.xlu2 %v1792_v34, %s2708_s30  ;;  %v1795_v35 = vsel %vm952_vm15, %v1728_v33, %v1740_v61 }
 0x6e5   : > { %1845 = vrot.lane.b32.xlu0 %v1795_v35, %s2708_s30 }
 0x6e9   : > { %v1749_v36 = vpop.permute.xlu1 %1748  ;;  %v1653_v7 = vpop.permute.xlu2 %1652 }
 0x6ea   : > { %v1753_v8 = vsel %vm1750_vm8, %v1747_v26, %v1749_v36  ;;  %v1737_v56 = vpop.permute.xlu0 %1736  ;;  %v2140_v26 = vld [vmem:[%s3712_s19] sm:$0xff] }
 0x6eb   : > { %1855 = vrot.lane.b32.xlu1 %v1753_v8, %s2708_s30  ;;  %v1741_v45 = vsel %vm1738_vm10, %v1735_v32, %v1737_v56  ;;  %v1801_v20 = vsel %vm952_vm15, %v1725_v42, %v1737_v56 }
 0x6ec   : > { %1857 = vrot.lane.b32.xlu2 %v1749_v36, %s2708_s30  ;;  %v1798_v38 = vsel %vm952_vm15, %v1729_v46, %v1741_v45 }
 0x6f1   : > { %v1689_v47 = vpop.permute.xlu1 %1688  ;;  %v1655_v21 = vpop.permute.xlu2 %1654 }
 0x6f2   : > { %v1665_v49 = vpop.permute.xlu0 %1664  ;;  %v1694_v53 = vsel %vm1692_vm13, %v1687_v13, %v1689_v47  ;;  %v1765_v24 = vsel %vm952_vm15, %v3379_v3, %v1655_v21 }
 0x6f3   : > { %1847 = vrot.lane.b32.xlu1 %v1798_v38, %s2708_s30  ;;  %v1670_v59 = vsel %vm1668_vm4, %v3397_v9, %v1665_v49 }
 0x6f9   : > { %v1701_v51 = vpop.permute.xlu1 %1700 }
 0x6fa   : > { %v1706_v30 = vsel %vm1704_vm14, %v1699_v15, %v1701_v51  ;;  %v1677_v55 = vpop.permute.xlu0 %1676  ;;  %v1707_v62 = vsel %vm1704_vm14, %v1701_v51, %v1703_v50  ;;  %v1658_v15 = vsel %vm1656_vm9, %v3404_v10, %v1653_v7  ;;  %v1659_v10 = vsel %vm1656_vm9, %v1653_v7, %v1655_v21 }
 0x6fb   : > { %v1783_v54 = vsel %vm952_vm15, %v1694_v53, %v1706_v30  ;;  %v1682_v57 = vsel %vm1680_vm2, %v1675_v17, %v1677_v55  ;;  %v1759_v0 = vsel %vm952_vm15, %v3343_v41, %v1658_v15  ;;  %v1762_v23 = vsel %vm952_vm15, %v3372_v60, %v1659_v10  ;;  %v1947_v41 = vld [vmem:[%s3707_s14] sm:$0xff] }
 0x6fc   : > { %1837 = vrot.lane.b32.xlu0 %v1783_v54, %s2708_s30  ;;  %v1771_v13 = vsel %vm952_vm15, %v1670_v59, %v1682_v57  ;;  %v2131_v60 = vld [vmem:[%s3711_s18] sm:$0xff]  ;;  %v1959_v51 = vunpack.c.h.b16 %v3331_v12  ;;  %v2017_v30 = vunpack.c.h.b16 %v3143_v28  ;;  %v1960_v7 = vunpack.c.l.b16 %v3324_v18 }
 0x6fd   : > { %v1802_v12 = vld [vmem:[%s3705_s12] sm:$0xf]  ;;  %vm2371_vm14 = vcmask 458112  }
 0x6fe   : > { %v1962_v54 = vpack.c.b16 %v1959_v51, %v1959_v51  ;;  %v1963_v15 = vpack.c.b16 %v1960_v7, %v1960_v7  ;;  %v1956_v10 = vld [vmem:[%s3708_s15] sm:$0xf]  ;;  %v3568_v51 = vld [vmem:[%s3780_s7 + $0x10] sm:$0xff] }
 0x701   : > { %v1691_v58 = vpop.permute.xlu1 %1690 }
 0x702   : > { %v1695_v5 = vsel %vm1692_vm13, %v1689_v47, %v1691_v58  ;;  %v1667_v14 = vpop.permute.xlu0 %1666  ;;  %v1789_v1 = vsel %vm952_vm15, %v1691_v58, %v1703_v50  ;;  %v1957_v47 = vld [vmem:[%s3709_s16] sm:$0xf]  ;;  %vm2341_vm13 = vcmask 392512  }
 0x703   : > { %v1786_v11 = vsel %vm952_vm15, %v1695_v5, %v1707_v62  ;;  %v1671_v9 = vsel %vm1668_vm4, %v1665_v49, %v1667_v14  ;;  %2497 = vmatmul.msk.bf16.vlgmr.msrb.gmra.mxu0 %vm1964_vm1, %v1957_v47  ;;  %v2020_v62 = vpack.c.b16 %v2017_v30, %v2017_v30  ;;  %v1972_v5 = vsel %vm952_vm15, %v1962_v54, 0  ;;  %v3577_v30 = vld [vmem:[%s3780_s7 + $0x8] sm:$0xff]  ;;  %v3586_v54 = vld [vmem:[%s3780_s7] sm:$0xff] }
 0x704   : > { %1839 = vrot.lane.b32.xlu1 %v1786_v11, %s2708_s30  ;;  %1829 = vrot.lane.b32.xlu0 %v1771_v13, %s2708_s30 }
 0x705   : > { %v2029_v13 = vsel %vm952_vm15, %v2020_v62, 0 }
 0x709   : > { %v1679_v17 = vpop.permute.xlu1 %1678 }
 0x70a   : > { %v1683_v19 = vsel %vm1680_vm2, %v1677_v55, %v1679_v17  ;;  %v1777_v22 = vsel %vm952_vm15, %v1667_v14, %v1679_v17  ;;  %v2018_v14 = vunpack.c.l.b16 %v3141_v27  ;;  %vm2401_vm2 = vcmask 523712  }
 0x70b   : > { %v1774_v4 = vsel %vm952_vm15, %v1671_v9, %v1683_v19 }
 0x70c   : > { %1821 = vrot.lane.b32.xlu1 %v1759_v0, %s2708_s30  ;;  %1849 = vrot.lane.b32.xlu0 %v1801_v20, %s2708_s30  ;;  %v2021_v18 = vpack.c.b16 %v2018_v14, %v2018_v14  ;;  %v1975_v0 = vsel %vm952_vm15, %v1963_v15, 0 }
 0x70d   : > { %1831 = vrot.lane.b32.xlu2 %v1774_v4, %s2708_s30 }
 0x70e   : > { %v2032_v4 = vsel %vm952_vm15, %v2021_v18, 0 }
 0x713   : > { %2500 = vmatmul.msk.bf16.vlgmr.msra.gmra.mxu0 %vm1964_vm1, %v1956_v10 }
 0x714   : > { %1823 = vrot.lane.b32.xlu1 %v1762_v23, %s2708_s30  ;;  %1833 = vrot.lane.b32.xlu0 %v1777_v22, %s2708_s30 }
 0x715   : > { %1841 = vrot.lane.b32.xlu2 %v1789_v1, %s2708_s30 }
 0x71c   : > { %1825 = vrot.lane.b32.xlu1 %v1765_v24, %s2708_s30  ;;  %1950 = vperm.xlu0 %2605, %v1947_v41   ;;  %s2709_s30 = smov 48  }
 0x71d   : > { %1941 = vperm.xlu2 %2604, %v1938_v25  }
 0x71f   : > { %v1836_v37 = vpop.permute.xlu2 %1835 }
 0x724   : > { %2134 = vperm.xlu1 %2603, %v2131_v60  }
 0x725   : > { %2143 = vperm.xlu2 %2604, %v2140_v26  }
 0x727   : > { %v1828_v29 = vpop.permute.xlu2 %1827 }
 0x73e   : > { %v1844_v31 = vpop.permute.xlu2 %1843 }
 0x745   : > { %v1852_v63 = vpop.permute.xlu0 %1851 }
 0x746   : > { %v1854_v16 = vpop.permute.xlu1 %1853  ;;  %v1858_v40 = vpop.permute.xlu2 %1857 }
 0x747   : > { %v1872_v3 = vsel %vm1859_vm12, %v1852_v63, %v1854_v16  ;;  %v2073_v63 = vld [vmem:[%s3710_s17] sm:$0xf] }
 0x748   : > { %v1891_v2 = vsel %vm952_vm15, %v1872_v3, 0 }
 0x749   : > { %1902 = vmatpush.bf16.msra.mxu1 %v1891_v2 }
 0x74d   : > { %v1820_v48 = vpop.permute.xlu0 %1819 }
 0x757   : > { %v1846_v6 = vpop.permute.xlu0 %1845 }
 0x758   : > { %v1869_v39 = vsel %vm1859_vm12, %v1844_v31, %v1846_v6 }
 0x759   : > { %1903 = vmatpush.bf16.msra.mxu1 %v1869_v39 }
 0x75d   : > { %v1856_v32 = vpop.permute.xlu1 %1855 }
 0x75e   : > { %v1873_v33 = vsel %vm1859_vm12, %v1854_v16, %v1856_v32  ;;  %v1874_v61 = vsel %vm1859_vm12, %v1856_v32, %v1858_v40 }
 0x75f   : > { %v1894_v34 = vsel %vm952_vm15, %v1873_v33, 0  ;;  %v1897_v35 = vsel %vm952_vm15, %v1874_v61, 0 }
 0x760   : > { %1915 = vmatpush.bf16.msra.mxu2 %v1894_v34  ;;  %1928 = vmatpush.bf16.msra.mxu3 %v1897_v35 }
 0x765   : > { %v1848_v36 = vpop.permute.xlu1 %1847 }
 0x766   : > { %v1870_v8 = vsel %vm1859_vm12, %v1846_v6, %v1848_v36 }
 0x767   : > { %1916 = vmatpush.bf16.msra.mxu2 %v1870_v8  ;;  %v1832_v50 = vpop.permute.xlu2 %1831 }
 0x76e   : > { %v1838_v56 = vpop.permute.xlu0 %1837 }
 0x76f   : > { %v1866_v42 = vsel %vm1859_vm12, %v1836_v37, %v1838_v56  ;;  %v1842_v28 = vpop.permute.xlu2 %1841 }
 0x770   : > { %1904 = vmatpush.bf16.msra.mxu1 %v1866_v42 }
 0x776   : > { %v1840_v45 = vpop.permute.xlu1 %1839  ;;  %v1830_v46 = vpop.permute.xlu0 %1829 }
 0x777   : > { %v1863_v38 = vsel %vm1859_vm12, %v1828_v29, %v1830_v46  ;;  %v1867_v49 = vsel %vm1859_vm12, %v1838_v56, %v1840_v45  ;;  %v1864_v53 = vsel %vm1859_vm12, %v1830_v46, %v1832_v50  ;;  %v1868_v11 = vsel %vm1859_vm12, %v1840_v45, %v1842_v28  ;;  %v1942_v22 = vpop.permute.xlu2 %1941  ;;  %v3543_v56 = vld [vmem:[%s3780_s7 + $0x28] sm:$0xff] }
 0x778   : > { %1905 = vmatpush.bf16.msra.mxu1 %v1863_v38  ;;  %1917 = vmatpush.bf16.msra.mxu2 %v1867_v49  ;;  %v3552_v49 = vld [vmem:[%s3780_s7 + $0x20] sm:$0xff] }
 0x77c   : > { %1918 = vmatpush.bf16.msra.mxu2 %v1864_v53 }
 0x77e   : > { %v1822_v55 = vpop.permute.xlu1 %1821  ;;  %v1850_v57 = vpop.permute.xlu0 %1849 }
 0x77f   : > { %v1860_v58 = vsel %vm1859_vm12, %v1820_v48, %v1822_v55  ;;  %v1871_v59 = vsel %vm1859_vm12, %v1848_v36, %v1850_v57 }
 0x780   : > { %1906 = vmatpush.bf16.msra.mxu1 %v1860_v58  ;;  %1929 = vmatpush.bf16.msra.mxu3 %v1871_v59  ;;  %v3525_v41 = vpop.f32.mrf.mxu0 }
 0x783   : > { %2494 = vmatmul.msk.bf16.vlgmr.msra.gmra.mxu1 %vm1205_vm11, %v1802_v12 }
 0x784   : > { %1997 = vmatpush.bf16.msrb.mxu1 %v1972_v5  ;;  %1930 = vmatpush.bf16.msra.mxu3 %v1868_v11 }
 0x786   : > { %v1824_v17 = vpop.permute.xlu1 %1823  ;;  %v1834_v9 = vpop.permute.xlu0 %1833 }
 0x787   : > { %v1861_v19 = vsel %vm1859_vm12, %v1822_v55, %v1824_v17  ;;  %v1865_v20 = vsel %vm1859_vm12, %v1832_v50, %v1834_v9  ;;  %v3559_v50 = vld [vmem:[%s3780_s7 + $0x18] sm:$0xff] }
 0x788   : > { %2054 = vmatpush.bf16.msra.mxu1 %v2029_v13  ;;  %1919 = vmatpush.bf16.msra.mxu2 %v1861_v19  ;;  %v1988_v16 = vpop.f32.mrf.mxu0 }
 0x789   : > { %1931 = vmatpush.bf16.msra.mxu3 %v1865_v20 }
 0x78b   : > { %2495 = vmatmul.msk.bf16.vlgmr.msra.gmra.mxu2 %vm1205_vm11, %v1802_v12 }
 0x78c   : > { %2010 = vmatpush.bf16.msrb.mxu2 %v1975_v0 }
 0x78e   : > { %v1826_v27 = vpop.permute.xlu1 %1825  ;;  %v1951_v25 = vpop.permute.xlu0 %1950 }
 0x78f   : > { %v1862_v21 = vsel %vm1859_vm12, %v1824_v17, %v1826_v27 }
 0x790   : > { %2067 = vmatpush.bf16.msra.mxu2 %v2032_v4  ;;  %1932 = vmatpush.bf16.msra.mxu3 %v1862_v21  ;;  %v2043_v45 = vpop.f32.mrf.mxu0 }
 0x791   : > { %v2044_v57 = vadd.f32 %v2043_v45, %v3525_v41 }
 0x793   : > { %2496 = vmatmul.msk.bf16.vlgmr.msra.gmra.mxu3 %vm1205_vm11, %v1802_v12  ;;  %2498 = vmatmul.msk.bf16.vlgmr.msrb.gmra.mxu1 %vm1964_vm1, %v1957_v47  ;;  %v2144_v12 = vpop.permute.xlu2 %2143  ;;  %vm2313_vm11 = vcmask 130048  }
 0x796   : > { %v2135_v62 = vpop.permute.xlu1 %2134 }
 0x79b   : > { %2499 = vmatmul.msk.bf16.vlgmr.msrb.gmra.mxu2 %vm1964_vm1, %v1957_v47  ;;  %v2045_v47 = vpop.f32.mrf.mxu0 }
 0x79c   : > { %2172 = vmatpush.msrb.mxu2 %v3543_v56 }
 0x79e   : > { %2173 = vmatpush.msrb.mxu2 %v3552_v49 }
 0x7a0   : > { %2174 = vmatpush.msrb.mxu2 %v3559_v50 }
 0x7a2   : > { %2175 = vmatpush.msrb.mxu2 %v3568_v51 }
 0x7a3   : > { %2501 = vmatmul.msk.bf16.vlgmr.msra.gmra.mxu1 %vm1964_vm1, %v1956_v10 }
 0x7a4   : > { %2176 = vmatpush.msrb.mxu2 %v3577_v30 }
 0x7a6   : > { %2177 = vmatpush.msrb.mxu2 %v3586_v54 }
 0x7ab   : > { %2502 = vmatmul.msk.bf16.vlgmr.msra.gmra.mxu2 %vm1964_vm1, %v1956_v10 }
 0x7ac   : > { %2232 = vmatpush.msra.mxu2 %v3543_v56 }
 0x7ae   : > { %2233 = vmatpush.msra.mxu2 %v3552_v49 }
 0x7b0   : > { %2234 = vmatpush.msra.mxu2 %v3559_v50 }
 0x7b2   : > { %2235 = vmatpush.msra.mxu2 %v3568_v51 }
 0x7b4   : > { %2236 = vmatpush.msra.mxu2 %v3577_v30 }
 0x7b6   : > { %2237 = vmatpush.msra.mxu2 %v3586_v54 }
 0x800   : > { %v1908_v23 = vpop.f32.mrf.mxu1 }
 0x801   : > { %v1944_v1 = vmul.f32 %v1942_v22, %v1908_v23 }
 0x803   : > { %v1953_v24 = vadd.f32 %v1951_v25, %v1944_v1 }
 0x805   : > { %v2074_v60 = vpack.c.bf16 %v1953_v24, %v1953_v24 }
 0x807   : > { %v2081_v26 = vsel %vm952_vm15, %v2074_v60, 0 }
 0x808   : > { %v1910_v37 = vpop.f32.mrf.mxu1  ;;  %2096 = vmatpush.bf16.msrb.mxu3 %v2081_v26 }
 0x80b   : > { %2503 = vmatmul.msk.bf16.vlgmr.msrb.gmra.mxu3 %vm1964_vm1, %v2073_v63 }
 0x80c   : > { %2197 = vmatpush.msra.mxu3 %v3543_v56 }
 0x80e   : > { %v1921_v3 = vpop.f32.mrf.mxu2  ;;  %2198 = vmatpush.msra.mxu3 %v3552_v49 }
 0x80f   : > { %v1945_v2 = vmul.f32 %v1942_v22, %v1921_v3 }
 0x810   : > { %v3532_v29 = vpop.f32.mrf.mxu1  ;;  %2199 = vmatpush.msra.mxu3 %v3559_v50 }
 0x811   : > { %v1954_v48 = vadd.f32 %v1951_v25, %v1945_v2 }
 0x812   : > { %2200 = vmatpush.msra.mxu3 %v3568_v51 }
 0x813   : > { %v2075_v31 = vpack.c.bf16 %v1954_v48, %v1954_v48 }
 0x814   : > { %2201 = vmatpush.msra.mxu3 %v3577_v30 }
 0x815   : > { %v2084_v6 = vsel %vm952_vm15, %v2075_v31, 0 }
 0x816   : > { %v1923_v39 = vpop.f32.mrf.mxu2  ;;  %v1934_v40 = vpop.f32.mrf.mxu3  ;;  %2109 = vmatpush.bf16.msrb.mxu0 %v2084_v6  ;;  %2202 = vmatpush.msra.mxu3 %v3586_v54 }
 0x817   : > { %v1946_v32 = vmul.f32 %v1942_v22, %v1934_v40 }
 0x818   : > { %v2001_v33 = vpop.f32.mrf.mxu1  ;;  %2262 = vmatpush.msrb.mxu3 %v3543_v56 }
 0x819   : > { %v1955_v61 = vadd.f32 %v1951_v25, %v1946_v32  ;;  %2504 = vmatmul.msk.bf16.vlgmr.msrb.gmra.mxu0 %vm1964_vm1, %v2073_v63 }
 0x81a   : > { %2292 = vmatpush.msra.mxu0 %v3543_v56  ;;  %2263 = vmatpush.msrb.mxu3 %v3552_v49 }
 0x81b   : > { %v2076_v34 = vpack.c.bf16 %v1955_v61, %v1955_v61 }
 0x81c   : > { %2293 = vmatpush.msra.mxu0 %v3552_v49  ;;  %2264 = vmatpush.msrb.mxu3 %v3559_v50 }
 0x81d   : > { %v2087_v35 = vsel %vm952_vm15, %v2076_v34, 0  ;;  %vm2158_vm15 = vcmask 392192  }
 0x81e   : > { %v1936_v36 = vpop.f32.mrf.mxu3  ;;  %2122 = vmatpush.bf16.msrb.mxu1 %v2087_v35  ;;  %v3538_v8 = vpop.f32.mrf.mxu2  ;;  %2294 = vmatpush.msra.mxu0 %v3559_v50 }
 0x81f   : > { %2265 = vmatpush.msrb.mxu3 %v3568_v51 }
 0x820   : > { %v2056_v46 = vpop.f32.mrf.mxu1  ;;  %2295 = vmatpush.msra.mxu0 %v3568_v51 }
 0x821   : > { %2505 = vmatmul.msk.bf16.vlgmr.msrb.gmra.mxu1 %vm1964_vm1, %v2073_v63  ;;  %2266 = vmatpush.msrb.mxu3 %v3577_v30  ;;  %v2057_v28 = vadd.f32 %v2056_v46, %v3532_v29 }
 0x822   : > { %2327 = vmatpush.msra.mxu1 %v3543_v56  ;;  %2296 = vmatpush.msra.mxu0 %v3577_v30 }
 0x823   : > { %2267 = vmatpush.msrb.mxu3 %v3586_v54 }
 0x824   : > { %2328 = vmatpush.msra.mxu1 %v3552_v49  ;;  %2297 = vmatpush.msra.mxu0 %v3586_v54 }
 0x826   : > { %v2014_v42 = vpop.f32.mrf.mxu2  ;;  %2329 = vmatpush.msra.mxu1 %v3559_v50 }
 0x828   : > { %v2058_v38 = vpop.f32.mrf.mxu1  ;;  %2330 = vmatpush.msra.mxu1 %v3568_v51 }
 0x82a   : > { %2331 = vmatpush.msra.mxu1 %v3577_v30 }
 0x82c   : > { %2332 = vmatpush.msra.mxu1 %v3586_v54 }
 0x82e   : > { %v2069_v53 = vpop.f32.mrf.mxu2 }
 0x836   : > { %v2071_v55 = vpop.f32.mrf.mxu2 }
 0x88e   : > { %v2098_v58 = vpop.f32.mrf.mxu3 }
 0x88f   : > { %v2128_v59 = vadd.f32 %v2098_v58, %v2044_v57 }
 0x891   : > { %v2137_v5 = vmul.f32 %v2135_v62, %v2128_v59 }
 0x893   : > { %v2146_v7 = vadd.f32 %v2144_v12, %v2137_v5 }
 0x895   : > { %v2149_v11 = vadd.f32 %v2146_v7, %v2935_v43  ;;  %v2070_v43 = vadd.f32 %v2069_v53, %v3538_v8 }
 0x896   : > { %v2111_v13 = vpop.f32.mrf.mxu0  ;;  %v2100_v14 = vpop.f32.mrf.mxu3 }
 0x897   : > { %v2129_v15 = vadd.f32 %v2111_v13, %v2057_v28  ;;  %2214 = vrot.lane.b32.xlu1 %v2149_v11, %s3781_s21  ;;  %2183 = vrot.lane.b32.xlu0 %v2149_v11, %s3775_s5  ;;  %s3782_s5 = smov 112  }
 0x898   : > { %2506 = vmatmul.msk.f32.vlgmr.msrb.gmra.mxu2 %vm2158_vm15, %v2149_v11 }
 0x899   : > { %v2138_v17 = vmul.f32 %v2135_v62, %v2129_v15  ;;  %2357 = vmatpush.msrb.mxu2 %v3543_v56 }
 0x89b   : > { %v2147_v9 = vadd.f32 %v2144_v12, %v2138_v17  ;;  %2358 = vmatpush.msrb.mxu2 %v3552_v49 }
 0x89d   : > { %v2150_v19 = vadd.f32 %v2147_v9, %v2938_v44  ;;  %2359 = vmatpush.msrb.mxu2 %v3559_v50 }
 0x89e   : > { %v2124_v20 = vpop.f32.mrf.mxu1  ;;  %v2113_v18 = vpop.f32.mrf.mxu0 }
 0x89f   : > { %v2130_v0 = vadd.f32 %v2124_v20, %v2070_v43  ;;  %2216 = vrot.lane.b32.xlu2 %v2150_v19, %s3781_s21  ;;  %2248 = vrot.lane.b32.xlu0 %v2150_v19, %s3782_s5  ;;  %s2714_s5 = smov 40  }
 0x8a0   : > { %2360 = vmatpush.msrb.mxu2 %v3568_v51 }
 0x8a1   : > { %v2139_v4 = vmul.f32 %v2135_v62, %v2130_v0 }
 0x8a2   : > { %2361 = vmatpush.msrb.mxu2 %v3577_v30 }
 0x8a3   : > { %v2148_v27 = vadd.f32 %v2144_v12, %v2139_v4 }
 0x8a4   : > { %2362 = vmatpush.msrb.mxu2 %v3586_v54 }
 0x8a5   : > { %v2151_v44 = vadd.f32 %v2148_v27, %v2946_v52 }
 0x8a6   : > { %v2126_v21 = vpop.f32.mrf.mxu1 }
 0x8a7   : > { %2373 = vrot.lane.b32.xlu2 %v2151_v44, %s2709_s30  ;;  %2343 = vrot.lane.b32.xlu1 %v2151_v44, %s3771_s0  ;;  %s620_s0 = sand.u32 1, %s2660_s22  }
 0x8a8   : > { %2278 = vrot.lane.b32.xlu0 %v2150_v19, %s2710_s25  ;;  %s2482_s26 = sshll.u32 %s620_s0, 3 }
 0x8a9   : > { %s3643_s6 = scalar_lea.vmem [#allocation4], %s2482_s26  ;;  %s2404_s26 = scalar_lea.sflag [#allocation5], %s620_s0 }
 0x8af   : > { %2311 = vrot.lane.b32.xlu2 %v2151_v44, %s2711_s27  ;;  %2309 = vrot.lane.b32.xlu1 %v2150_v19, %s2711_s27 }
 0x8f9   : > { %v2217_v10 = vpop.permute.xlu2 %2216 }
 0x901   : > { %v2374_v41 = vpop.permute.xlu2 %2373 }
 0x909   : > { %v2215_v22 = vpop.permute.xlu1 %2214  ;;  %v2184_v52 = vpop.permute.xlu0 %2183 }
 0x90a   : > { %v2219_v23 = vsel %vm1384_vm6, %v2215_v22, %v2217_v10  ;;  %2507 = vmatmul.msk.f32.vlgmr.msra.gmra.mxu3 %vm2158_vm15, %v2184_v52  ;;  %v2312_v26 = vpop.permute.xlu2 %2311  ;;  %vm2246_vm6 = vcmask 195712  }
 0x90b   : > { %2508 = vmatmul.msk.f32.vlgmr.msra.gmra.mxu2 %vm2158_vm15, %v2219_v23  ;;  %2387 = vmatpush.msra.mxu3 %v3543_v56 }
 0x90d   : > { %2388 = vmatpush.msra.mxu3 %v3552_v49 }
 0x90f   : > { %2389 = vmatpush.msra.mxu3 %v3559_v50 }
 0x911   : > { %v2249_v1 = vpop.permute.xlu0 %2248  ;;  %2390 = vmatpush.msra.mxu3 %v3568_v51 }
 0x912   : > { %2509 = vmatmul.msk.f32.vlgmr.msrb.gmra.mxu3 %vm2158_vm15, %v2249_v1 }
 0x913   : > { %2391 = vmatpush.msra.mxu3 %v3577_v30 }
 0x915   : > { %2392 = vmatpush.msra.mxu3 %v3586_v54 }
 0x919   : > { %v2344_v25 = vpop.permute.xlu1 %2343 }
 0x91a   : > { %v2279_v24 = vpop.permute.xlu0 %2278  ;;  %2512 = vmatmul.msk.f32.vlgmr.msrb.gmra.mxu2 %vm2158_vm15, %v2344_v25  ;;  %2513 = vmatmul.msk.f32.vlgmr.msra.gmra.mxu3 %vm2158_vm15, %v2374_v41 }
 0x91b   : > { %v2179_v60 = vpop.f32.mrf.mxu2  ;;  %2510 = vmatmul.msk.f32.vlgmr.msra.gmra.mxu0 %vm2158_vm15, %v2279_v24 }
 0x91c   : > { %2182 = vst.msk [vmem:[%s3643_s6] sm:$0xff] %vm1964_vm1, %v2179_v60 }
 0x921   : > { %v2310_v37 = vpop.permute.xlu1 %2309 }
 0x922   : > { %v2314_v63 = vsel %vm2313_vm11, %v2310_v37, %v2312_v26 }
 0x923   : > { %2511 = vmatmul.msk.f32.vlgmr.msra.gmra.mxu1 %vm2158_vm15, %v2314_v63 }
 0x98d   : > { %v2204_v16 = vpop.f32.mrf.mxu3 }
 0x98e   : > { %v2239_v3 = vpop.f32.mrf.mxu2 }
 0x98f   : > { %2243 = vrot.lane.b32.xlu1 %v2239_v3, %s2711_s27 }
 0x995   : > { %v2269_v2 = vpop.f32.mrf.mxu3 }
 0x996   : > { %2273 = vrot.lane.b32.xlu2 %v2269_v2, %s2712_s8 }
 0x998   : > { %v2299_v29 = vpop.f32.mrf.mxu0 }
 0x999   : > { %2303 = vrot.lane.b32.xlu0 %v2299_v29, %s3781_s21  ;;  %s2515_s21 = sshll.u32 %s2841_s2, 3  ;;  %s2416_s2 = sshll.u32 %s3643_s6, 4  ;;  %s2417_s2 = int_to_ptr.vmem [resolvable:$true] %s2416_s2 }
 0x99a   : > { %s2414_s27 = scalar_lea.hbm %s3713_s20, %s2515_s21 }
 0x99d   : > { %v2364_v48 = vpop.f32.mrf.mxu2  ;;  %v2394_v6 = vpop.f32.mrf.mxu3 }
 0x99e   : > { %2368 = vrot.lane.b32.xlu2 %v2364_v48, %s2709_s30  ;;  %s2626_s30 = scalar_lea.hbm %s3713_s20, 16 }
 0x9a0   : > { %v2334_v31 = vpop.f32.mrf.mxu1 }
 0x9a1   : > { %2208 = vrot.lane.b32.xlu0 %v2204_v16, %s2713_s9  ;;  %2338 = vrot.lane.b32.xlu1 %v2334_v31, %s2714_s5 }
 0x9a9   : > { %2398 = vrot.lane.b32.xlu0 %v2394_v6, %s3778_s28  ;;  %s2418_s28 = sshll.u32 %s2414_s27, 4  ;;  %s2419_s28 = int_to_ptr.hbm [resolvable:$true] %s2418_s28 }
 0x9aa   : > { %s2620_s8 = sshra.s32 %s2419_s28, 4  ;;  %s2621_s8 = int_to_ptr.hbm [resolvable:$true] %s2620_s8 }
 0x9ab   : > { %s2622_s9 = scalar_lea.hbm %s2621_s8, 8  ;;  %p2627_p0 = scmp.lt.s32.totalorder %s2621_s8, %s3713_s20 }
 0x9ac   : > { %p2623_p11 = scmp.ne.s32.totalorder %s2621_s8, %s2622_s9  ;;  %p2628_p1 = scmp.lt.s32.totalorder %s2626_s30, %s2622_s9 }
 0x9ae   : > { %p2624_p12 = pnand %p2623_p11, %p2858_p5  ;;  %p2629_p2 = por %p2628_p1, %p2627_p0 }
 0x9b0   : > { %p2625_p13 = pneg %p2624_p12 }
 0x9b2   : > { %p2630_p3 = pnand %p2629_p2, %p2625_p13 }
 0x9f0   : > { %v2274_v40 = vpop.permute.xlu2 %2273 }
 0x9f8   : > { %v2369_v34 = vpop.permute.xlu2 %2368 }
 0xa01   : > { %v2244_v32 = vpop.permute.xlu1 %2243 }
 0xa0b   : > { %v2304_v39 = vpop.permute.xlu0 %2303 }
 0xa13   : > { %v2209_v33 = vpop.permute.xlu0 %2208  ;;  %v2339_v61 = vpop.permute.xlu1 %2338 }
 0xa14   : > { %2212 = vst.msk [vmem:[%s3643_s6] sm:$0xff] %vm2211_vm5, %v2209_v33 }
 0xa15   : > { %2247 = vst.msk [vmem:[%s3643_s6] sm:$0xff] %vm2246_vm6, %v2244_v32 }
 0xa16   : > { %2277 = vst.msk [vmem:[%s3643_s6] sm:$0xff] %vm2276_vm7, %v2274_v40 }
 0xa17   : > { %2307 = vst.msk [vmem:[%s3643_s6] sm:$0xff] %vm2306_vm3, %v2304_v39 }
 0xa18   : > { %2342 = vst.msk [vmem:[%s3643_s6] sm:$0xff] %vm2341_vm13, %v2339_v61 }
 0xa19   : > { %2372 = vst.msk [vmem:[%s3643_s6] sm:$0xff] %vm2371_vm14, %v2369_v34 }
 0xa1b   : > { %v2399_v35 = vpop.permute.xlu0 %2398 }
 0xa1c   : > { %2402 = vst.msk [vmem:[%s3643_s6] sm:$0xff] %vm2401_vm2, %v2399_v35 }
 0xa1d   : > { %2633 = shalt.err (!%p2630_p3)
}
 0xa1e   : > { %2519 = dma.vmem_to_hbm [thread:$0]  (%p2858_p5), %s2417_s2, 128, %s2419_s28, %s2404_s26  }
 0xa1f PF: > { %p2525_p4 = scmp.ge.s32.totalorder %s2668_s24, 2  ;;  %s2430_s0 = sand.u32 1, %s2656_s1  }
 0xa20   : > { %s2431_s6 = scalar_lea.sflag [#allocation5], %s2430_s0 }
 0xa21   : > { %p2522_p7 = pnand %p2525_p4, %p2862_p6 }
 0xa23   : > { %p2523_p8 = pneg %p2522_p7 }
 0xa25   : > { %2651 = dma.done.wait (%p2523_p8), %s2431_s6, 128  }
 0xa26   : > { %2653 = vsyncadd (%p2523_p8), %s2431_s6, 4294967168  ;;  %s3783_s8 = sld [smem:[#allocation7_spill]]  ;;  %p30_p9 = scmp.ge.s32.totalorder %s2845_s3, 4  }
 0xa27   : > { %s3784_s1 = smov %s2660_s22  ;;  %s3785_s22 = smov %s2664_s23 }
 0xa28   : > { %s3787_s24 = smov %s2845_s3  ;;  %32 = sbr.rel (!%p30_p9) target bundleno = 14 (0xe), region = 135 }
 0xa2c   : > { %s3786_s23 = smov %s3783_s8 }
 0xa2d   :  { %2437 = vsyncpa [#allocation5], 1 }
 0xa2e   :  { %2439 = vsyncpa [#allocation5 + $0x1], 1 }

</bundles_post_ra>
